<compile_context>
chip_gen: v7x
topology: tpu7x:2x2x1
jax: 0.10.0
libtpu: 0.0.40
codegen_flags: <defaults>
</compile_context>

<pallas_src>
import functools

import jax
import jax.numpy as jnp
from jax.experimental import pallas as pl
from jax.experimental.pallas import tpu as pltpu


# -----------------------------------------------------------------------------
# Pallas kernels
# -----------------------------------------------------------------------------
def _matmul_bias_kernel(x_ref, w_ref, b_ref, o_ref):
  o_ref[...] = (jnp.dot(x_ref[...], w_ref[...],
                        preferred_element_type=jnp.float32)
                + b_ref[...]).astype(o_ref.dtype)


def matmul_bias(x, w_t, bias):
  """x: (N, K), w_t: (K, M), bias: (1, M)  ->  (N, M).

  Output columns are padded to a multiple of 128 (lane-dense stores) and rows are
  tiled when N is large; padding is sliced off before returning.
  """
  N, K = x.shape
  M = w_t.shape[1]

  # Lane-dense output: pad M up to a multiple of 128.
  Mp = ((M + 127) // 128) * 128
  if Mp != M:
    w_t = jnp.pad(w_t, ((0, 0), (0, Mp - M)))
    bias = jnp.pad(bias, ((0, 0), (0, Mp - M)))

  # Row tiling (only kicks in at realistic sizes; toy sizes use a single block).
  ROW_TILE = 256
  if N > ROW_TILE:
    Np = ((N + ROW_TILE - 1) // ROW_TILE) * ROW_TILE
    if Np != N:
      x = jnp.pad(x, ((0, Np - N), (0, 0)))
    tile_n = ROW_TILE
  else:
    Np = N
    tile_n = N

  out = pl.pallas_call(
      _matmul_bias_kernel,
      out_shape=jax.ShapeDtypeStruct((Np, Mp), x.dtype),
      grid=(Np // tile_n,),
      in_specs=[
          pl.BlockSpec((tile_n, K), lambda i: (i, 0)),
          pl.BlockSpec((K, Mp), lambda i: (0, 0)),
          pl.BlockSpec((1, Mp), lambda i: (0, 0)),
      ],
      out_specs=pl.BlockSpec((tile_n, Mp), lambda i: (i, 0)),
      compiler_params=pltpu.CompilerParams(
          dimension_semantics=("parallel",)),
  )(x, w_t, bias)
  return out[:N, :M]


def _lstm_recurrence_kernel(gx_ref, whh_ref, h0_ref, c0_ref,
                            y_ref, hT_ref, cT_ref, h_sc, c_sc):
  """Processes one chunk of Tc timesteps per grid step.

  gx_ref : (Tc, B, 4H)  precomputed x @ W_ih^T + (b_ih + b_hh)  (time-major)
  whh_ref: (H, 4H)      recurrent weights (transposed)
  Gate order matches PyTorch: i, f, g, o.
  """
  c_idx = pl.program_id(0)

  @pl.when(c_idx == 0)
  def _():
    h_sc[...] = h0_ref[...].astype(jnp.float32)
    c_sc[...] = c0_ref[...].astype(jnp.float32)

  H = h_sc.shape[-1]
  Tc = gx_ref.shape[0]

  # Static unroll over the chunk (Tc is a compile-time constant => static slices).
  for s in range(Tc):
    gates = (gx_ref[s].astype(jnp.float32)
             + jnp.dot(h_sc[...], whh_ref[...],
                       preferred_element_type=jnp.float32))      # (B, 4H)
    # i and f are adjacent columns -> single sigmoid launch over (B, 2H).
    i_f = jax.nn.sigmoid(gates[:, 0:2 * H])
    i_g = i_f[:, 0:H]
    f_g = i_f[:, H:2 * H]
    g_g = jnp.tanh(gates[:, 2 * H:3 * H])
    o_g = jax.nn.sigmoid(gates[:, 3 * H:4 * H])

    c_new = f_g * c_sc[...] + i_g * g_g
    h_new = o_g * jnp.tanh(c_new)

    c_sc[...] = c_new
    h_sc[...] = h_new
    y_ref[s] = h_new.astype(y_ref.dtype)

  # Only write the final states on the last grid step (saves vst slots elsewhere).
  @pl.when(c_idx == pl.num_programs(0) - 1)
  def _():
    hT_ref[...] = h_sc[...].astype(hT_ref.dtype)
    cT_ref[...] = c_sc[...].astype(cT_ref.dtype)


def lstm_layer(gates_x_tm, w_hh_t, h0, c0, chunk):
  """Run the recurrence for one layer.

  gates_x_tm: (T, B, 4H) time-major precomputed input projection (+ biases)
  w_hh_t    : (H, 4H)
  h0, c0    : (B, H)
  Returns y: (T, B, H), h_T: (B, H), c_T: (B, H).
  """
  T, B, G = gates_x_tm.shape
  H = h0.shape[-1]
  dt = gates_x_tm.dtype

  out_shapes = (
      jax.ShapeDtypeStruct((T, B, H), dt),
      jax.ShapeDtypeStruct((B, H), dt),
      jax.ShapeDtypeStruct((B, H), dt),
  )
  return pl.pallas_call(
      _lstm_recurrence_kernel,
      out_shape=out_shapes,
      grid=(T // chunk,),
      in_specs=[
          pl.BlockSpec((chunk, B, G), lambda c: (c, 0, 0)),   # gates chunk
          pl.BlockSpec((H, G), lambda c: (0, 0)),             # W_hh^T (resident)
          pl.BlockSpec((B, H), lambda c: (0, 0)),             # h0
          pl.BlockSpec((B, H), lambda c: (0, 0)),             # c0
      ],
      out_specs=(
          pl.BlockSpec((chunk, B, H), lambda c: (c, 0, 0)),   # y chunk
          pl.BlockSpec((B, H), lambda c: (0, 0)),             # h_T (resident)
          pl.BlockSpec((B, H), lambda c: (0, 0)),             # c_T (resident)
      ),
      scratch_shapes=[
          pltpu.VMEM((B, H), jnp.float32),                    # h carry
          pltpu.VMEM((B, H), jnp.float32),                    # c carry
      ],
      compiler_params=pltpu.CompilerParams(
          dimension_semantics=("arbitrary",)),                # recurrence over time
  )(gates_x_tm, w_hh_t, h0, c0)


# -----------------------------------------------------------------------------
# Model: parameter init + forward wrapper
# -----------------------------------------------------------------------------
def init_params(key, vocab_size, embedding_size, hidden_size, num_layers,
                num_class, init_range=0.1):
  """Mirror PyTorch init_weights: dim>1 -> uniform(-0.1, 0.1), dim==1 -> 0."""
  params = {}
  key, k_emb = jax.random.split(key)
  params["embedding"] = jax.random.uniform(
      k_emb, (vocab_size, embedding_size), jnp.float32, -init_range, init_range)

  lstm = []
  for layer in range(num_layers):
    in_size = embedding_size if layer == 0 else hidden_size
    key, k1, k2 = jax.random.split(key, 3)
    w_ih = jax.random.uniform(k1, (4 * hidden_size, in_size), jnp.float32,
                              -init_range, init_range)
    w_hh = jax.random.uniform(k2, (4 * hidden_size, hidden_size), jnp.float32,
                              -init_range, init_range)
    b_ih = jnp.zeros((4 * hidden_size,), jnp.float32)
    b_hh = jnp.zeros((4 * hidden_size,), jnp.float32)
    lstm.append((w_ih, w_hh, b_ih, b_hh))
  params["lstm"] = lstm

  key, k_fc = jax.random.split(key)
  params["fc_w"] = jax.random.uniform(k_fc, (num_class, hidden_size),
                                      jnp.float32, -init_range, init_range)
  params["fc_b"] = jnp.zeros((num_class,), jnp.float32)
  return params


def _choose_chunk(T, max_chunk=16):
  c = min(T, max_chunk)
  while T % c:
    c -= 1
  return c


@functools.partial(jax.jit, static_argnames=("num_layers", "hidden_size",
                                             "num_class"))
def lstm_pr_forward(params, inputs, hidden, *, num_layers, hidden_size,
                    num_class):
  """Forward pass of LSTMPR.

  inputs : (B, T) int32 token ids (batch-first, like PyTorch batch_first=True)
  hidden : (h0, c0), each (num_layers, B, hidden_size)
  Returns (score (B, T, num_class), (h_n, c_n)).
  """
  h0_all, c0_all = hidden
  B, T = inputs.shape
  chunk = _choose_chunk(T)

  # Embedding lookup (data-dependent gather) stays in plain JAX, emitted directly
  # in time-major layout so no per-layer transposes are needed downstream.
  x_tm = jnp.take(params["embedding"], inputs.T, axis=0)        # (T, B, E)

  h_finals, c_finals = [], []
  for layer in range(num_layers):
    w_ih, w_hh, b_ih, b_hh = params["lstm"][layer]
    din = w_ih.shape[1]
    bias = (b_ih + b_hh).reshape(1, -1)

    # Hoisted input projection: one big MXU-shaped matmul over all T*B rows.
    gx = matmul_bias(x_tm.reshape(T * B, din), jnp.transpose(w_ih), bias)
    gx = gx.reshape(T, B, 4 * hidden_size)

    y_tm, h_T, c_T = lstm_layer(gx, jnp.transpose(w_hh),
                                h0_all[layer], c0_all[layer], chunk)
    h_finals.append(h_T)
    c_finals.append(c_T)
    x_tm = y_tm                                                  # (T, B, H)

  # Final Linear on all rows (lane-padded output inside matmul_bias).
  score_flat = matmul_bias(x_tm.reshape(T * B, hidden_size),
                           jnp.transpose(params["fc_w"]),
                           params["fc_b"].reshape(1, -1))        # (T*B, C)
  score = jnp.transpose(score_flat.reshape(T, B, num_class), (1, 0, 2))

  h_n = jnp.stack(h_finals, axis=0)                              # (L, B, H)
  c_n = jnp.stack(c_finals, axis=0)
  return score, (h_n, c_n)


# -----------------------------------------------------------------------------
# Pure-JAX reference (for correctness check)
# -----------------------------------------------------------------------------
def lstm_pr_reference(params, inputs, hidden):
  h0_all, c0_all = hidden
  x = jnp.take(params["embedding"], inputs, axis=0)              # (B, T, E)
  B, T, _ = x.shape
  hs, cs = [], []
  for layer, (w_ih, w_hh, b_ih, b_hh) in enumerate(params["lstm"]):
    H = w_hh.shape[1]

    def step(carry, x_t, w_ih=w_ih, w_hh=w_hh, b_ih=b_ih, b_hh=b_hh, H=H):
      h, c = carry
      gates = x_t @ w_ih.T + h @ w_hh.T + b_ih + b_hh
      i = jax.nn.sigmoid(gates[:, 0:H])
      f = jax.nn.sigmoid(gates[:, H:2 * H])
      g = jnp.tanh(gates[:, 2 * H:3 * H])
      o = jax.nn.sigmoid(gates[:, 3 * H:4 * H])
      c = f * c + i * g
      h = o * jnp.tanh(c)
      return (h, c), h

    (hT, cT), ys = jax.lax.scan(step, (h0_all[layer], c0_all[layer]),
                                jnp.transpose(x, (1, 0, 2)))
    x = jnp.transpose(ys, (1, 0, 2))
    hs.append(hT)
    cs.append(cT)
  score = x.reshape(B * T, -1) @ params["fc_w"].T + params["fc_b"]
  return score.reshape(B, T, -1), (jnp.stack(hs), jnp.stack(cs))


# -----------------------------------------------------------------------------
# Example run
# -----------------------------------------------------------------------------
if __name__ == "__main__":
  vocab_size = 50
  embedding_size = 16
  hidden_size = 32
  num_layers = 2
  num_class = 5
  batch = 2
  seq = 8

  key = jax.random.PRNGKey(0)
  key, k_params, k_in = jax.random.split(key, 3)
  params = init_params(k_params, vocab_size, embedding_size, hidden_size,
                       num_layers, num_class)

  inputs = jax.random.randint(k_in, (batch, seq), 0, vocab_size, jnp.int32)
  h0 = jnp.zeros((num_layers, batch, hidden_size), jnp.float32)
  c0 = jnp.zeros((num_layers, batch, hidden_size), jnp.float32)

  score, (h_n, c_n) = lstm_pr_forward(
      params, inputs, (h0, c0),
      num_layers=num_layers, hidden_size=hidden_size, num_class=num_class)
  jax.block_until_ready((score, h_n, c_n))

  assert score.shape == (batch, seq, num_class)
  assert h_n.shape == (num_layers, batch, hidden_size)
  assert c_n.shape == (num_layers, batch, hidden_size)
  assert bool(jnp.all(jnp.isfinite(score)))

  # Numerical check against a pure-JAX reference.
  score_ref, (h_ref, c_ref) = lstm_pr_reference(params, inputs, (h0, c0))
  assert float(jnp.max(jnp.abs(score - score_ref))) < 2e-3
  assert float(jnp.max(jnp.abs(h_n - h_ref))) < 2e-3
  assert float(jnp.max(jnp.abs(c_n - c_ref))) < 2e-3

  print("KERNEL_OK")
</pallas_src>

<mosaic_0001>
module attributes {stable_mosaic.version = 11 : i64} {
  func.func @_matmul_bias_kernel(%arg0: i32, %arg1: memref<16x16xf32, #tpu.memory_space<vmem>>, %arg2: memref<16x128xf32, #tpu.memory_space<vmem>>, %arg3: memref<1x128xf32, #tpu.memory_space<vmem>>, %arg4: memref<16x128xf32, #tpu.memory_space<vmem>>) attributes {dimension_semantics = [#tpu.dimension_semantics<parallel>], iteration_bounds = array<i64: 1>, scalar_prefetch = 0 : i64, scratch_operands = 0 : i64, tpu.core_type = #tpu.core_type<tc>, window_params = [{transform_indices = @transform_0, window_bounds = array<i64: 16, 16>}, {pipeline_mode = #tpu.pipeline_mode<synchronous>, transform_indices = @transform_1, window_bounds = array<i64: 16, 128>}, {pipeline_mode = #tpu.pipeline_mode<synchronous>, transform_indices = @transform_2, window_bounds = array<i64: 1, 128>}, {transform_indices = @transform_3, window_bounds = array<i64: 16, 128>}]} {
    %c0 = arith.constant 0 : index
    %c0_0 = arith.constant 0 : index
    %0 = vector.load %arg1[%c0, %c0_0] : memref<16x16xf32, #tpu.memory_space<vmem>>, vector<16x16xf32>
    %c0_1 = arith.constant 0 : index
    %c0_2 = arith.constant 0 : index
    %1 = vector.load %arg2[%c0_1, %c0_2] : memref<16x128xf32, #tpu.memory_space<vmem>>, vector<16x128xf32>
    %cst = arith.constant dense<0.000000e+00> : vector<16x128xf32>
    %2 = tpu.matmul %0, %1, %cst {dimension_numbers = #tpu.dot_dimension_numbers<[1], [0], [0], [1], [0, 0, 1, 1], [], []>} : vector<16x16xf32>, vector<16x128xf32>, vector<16x128xf32> -> vector<16x128xf32>
    %c0_3 = arith.constant 0 : index
    %c0_4 = arith.constant 0 : index
    %3 = vector.load %arg3[%c0_3, %c0_4] : memref<1x128xf32, #tpu.memory_space<vmem>>, vector<1x128xf32>
    %4 = vector.broadcast %3 : vector<1x128xf32> to vector<16x128xf32>
    %5 = arith.addf %2, %4 : vector<16x128xf32>
    %c0_5 = arith.constant 0 : index
    %c0_6 = arith.constant 0 : index
    %6 = vector.load %arg4[%c0_5, %c0_6] : memref<16x128xf32, #tpu.memory_space<vmem>>, vector<16x128xf32>
    tpu.vector_store %arg4[%c0_5, %c0_6], %5 {strides = array<i32>} : memref<16x128xf32, #tpu.memory_space<vmem>>, vector<16x128xf32>,
    return
  }
  func.func @transform_0(%arg0: i32) -> (i32, i32) {
    %c0_i32 = arith.constant 0 : i32
    %c0_i32_0 = arith.constant 0 : i32
    return %arg0, %c0_i32 : i32, i32
  }
  func.func @transform_1(%arg0: i32) -> (i32, i32) {
    %c0_i32 = arith.constant 0 : i32
    %c0_i32_0 = arith.constant 0 : i32
    %c0_i32_1 = arith.constant 0 : i32
    return %c0_i32, %c0_i32_0 : i32, i32
  }
  func.func @transform_2(%arg0: i32) -> (i32, i32) {
    %c0_i32 = arith.constant 0 : i32
    %c0_i32_0 = arith.constant 0 : i32
    %c0_i32_1 = arith.constant 0 : i32
    return %c0_i32, %c0_i32_0 : i32, i32
  }
  func.func @transform_3(%arg0: i32) -> (i32, i32) {
    %c0_i32 = arith.constant 0 : i32
    %c0_i32_0 = arith.constant 0 : i32
    return %arg0, %c0_i32 : i32, i32
  }
}

module attributes {stable_mosaic.version = 11 : i64} {
  func.func @_matmul_bias_kernel(%arg0: i32, %arg1: memref<16x32xf32, #tpu.memory_space<vmem>>, %arg2: memref<32x128xf32, #tpu.memory_space<vmem>>, %arg3: memref<1x128xf32, #tpu.memory_space<vmem>>, %arg4: memref<16x128xf32, #tpu.memory_space<vmem>>) attributes {dimension_semantics = [#tpu.dimension_semantics<parallel>], iteration_bounds = array<i64: 1>, scalar_prefetch = 0 : i64, scratch_operands = 0 : i64, tpu.core_type = #tpu.core_type<tc>, window_params = [{transform_indices = @transform_0, window_bounds = array<i64: 16, 32>}, {pipeline_mode = #tpu.pipeline_mode<synchronous>, transform_indices = @transform_1, window_bounds = array<i64: 32, 128>}, {pipeline_mode = #tpu.pipeline_mode<synchronous>, transform_indices = @transform_2, window_bounds = array<i64: 1, 128>}, {transform_indices = @transform_3, window_bounds = array<i64: 16, 128>}]} {
    %c0 = arith.constant 0 : index
    %c0_0 = arith.constant 0 : index
    %0 = vector.load %arg1[%c0, %c0_0] : memref<16x32xf32, #tpu.memory_space<vmem>>, vector<16x32xf32>
    %c0_1 = arith.constant 0 : index
    %c0_2 = arith.constant 0 : index
    %1 = vector.load %arg2[%c0_1, %c0_2] : memref<32x128xf32, #tpu.memory_space<vmem>>, vector<32x128xf32>
    %cst = arith.constant dense<0.000000e+00> : vector<16x128xf32>
    %2 = tpu.matmul %0, %1, %cst {dimension_numbers = #tpu.dot_dimension_numbers<[1], [0], [0], [1], [0, 0, 1, 1], [], []>} : vector<16x32xf32>, vector<32x128xf32>, vector<16x128xf32> -> vector<16x128xf32>
    %c0_3 = arith.constant 0 : index
    %c0_4 = arith.constant 0 : index
    %3 = vector.load %arg3[%c0_3, %c0_4] : memref<1x128xf32, #tpu.memory_space<vmem>>, vector<1x128xf32>
    %4 = vector.broadcast %3 : vector<1x128xf32> to vector<16x128xf32>
    %5 = arith.addf %2, %4 : vector<16x128xf32>
    %c0_5 = arith.constant 0 : index
    %c0_6 = arith.constant 0 : index
    %6 = vector.load %arg4[%c0_5, %c0_6] : memref<16x128xf32, #tpu.memory_space<vmem>>, vector<16x128xf32>
    tpu.vector_store %arg4[%c0_5, %c0_6], %5 {strides = array<i32>} : memref<16x128xf32, #tpu.memory_space<vmem>>, vector<16x128xf32>,
    return
  }
  func.func @transform_0(%arg0: i32) -> (i32, i32) {
    %c0_i32 = arith.constant 0 : i32
    %c0_i32_0 = arith.constant 0 : i32
    return %arg0, %c0_i32 : i32, i32
  }
  func.func @transform_1(%arg0: i32) -> (i32, i32) {
    %c0_i32 = arith.constant 0 : i32
    %c0_i32_0 = arith.constant 0 : i32
    %c0_i32_1 = arith.constant 0 : i32
    return %c0_i32, %c0_i32_0 : i32, i32
  }
  func.func @transform_2(%arg0: i32) -> (i32, i32) {
    %c0_i32 = arith.constant 0 : i32
    %c0_i32_0 = arith.constant 0 : i32
    %c0_i32_1 = arith.constant 0 : i32
    return %c0_i32, %c0_i32_0 : i32, i32
  }
  func.func @transform_3(%arg0: i32) -> (i32, i32) {
    %c0_i32 = arith.constant 0 : i32
    %c0_i32_0 = arith.constant 0 : i32
    return %arg0, %c0_i32 : i32, i32
  }
}

module attributes {stable_mosaic.version = 11 : i64} {
  func.func @_lstm_recurrence_kernel(%arg0: i32, %arg1: memref<8x2x128xf32, #tpu.memory_space<vmem>>, %arg2: memref<32x128xf32, #tpu.memory_space<vmem>>, %arg3: memref<2x32xf32, #tpu.memory_space<vmem>>, %arg4: memref<2x32xf32, #tpu.memory_space<vmem>>, %arg5: memref<8x2x32xf32, #tpu.memory_space<vmem>>, %arg6: memref<2x32xf32, #tpu.memory_space<vmem>>, %arg7: memref<2x32xf32, #tpu.memory_space<vmem>>, %arg8: memref<2x32xf32, #tpu.memory_space<vmem>>, %arg9: memref<2x32xf32, #tpu.memory_space<vmem>>) attributes {dimension_semantics = [#tpu.dimension_semantics<arbitrary>], iteration_bounds = array<i64: 1>, scalar_prefetch = 0 : i64, scratch_operands = 2 : i64, tpu.core_type = #tpu.core_type<tc>, window_params = [{transform_indices = @transform_0, window_bounds = array<i64: 8, 2, 128>}, {pipeline_mode = #tpu.pipeline_mode<synchronous>, transform_indices = @transform_1, window_bounds = array<i64: 32, 128>}, {pipeline_mode = #tpu.pipeline_mode<synchronous>, transform_indices = @transform_2, window_bounds = array<i64: 2, 32>}, {pipeline_mode = #tpu.pipeline_mode<synchronous>, transform_indices = @transform_3, window_bounds = array<i64: 2, 32>}, {transform_indices = @transform_4, window_bounds = array<i64: 8, 2, 32>}, {pipeline_mode = #tpu.pipeline_mode<synchronous>, transform_indices = @transform_5, window_bounds = array<i64: 2, 32>}, {pipeline_mode = #tpu.pipeline_mode<synchronous>, transform_indices = @transform_6, window_bounds = array<i64: 2, 32>}]} {
    %c0_i32 = arith.constant 0 : i32
    %0 = arith.cmpi eq, %arg0, %c0_i32 : i32
    %1 = arith.extui %0 : i1 to i32
    %c0_i32_0 = arith.constant 0 : i32
    %2 = arith.cmpi ne, %1, %c0_i32_0 : i32
    scf.if %2 {
      %c0_146 = arith.constant 0 : index
      %c0_147 = arith.constant 0 : index
      %270 = vector.load %arg3[%c0_146, %c0_147] : memref<2x32xf32, #tpu.memory_space<vmem>>, vector<2x32xf32>
      %c0_148 = arith.constant 0 : index
      %c0_149 = arith.constant 0 : index
      %271 = vector.load %arg8[%c0_148, %c0_149] : memref<2x32xf32, #tpu.memory_space<vmem>>, vector<2x32xf32>
      tpu.vector_store %arg8[%c0_148, %c0_149], %270 {strides = array<i32>} : memref<2x32xf32, #tpu.memory_space<vmem>>, vector<2x32xf32>,
      %c0_150 = arith.constant 0 : index
      %c0_151 = arith.constant 0 : index
      %272 = vector.load %arg4[%c0_150, %c0_151] : memref<2x32xf32, #tpu.memory_space<vmem>>, vector<2x32xf32>
      %c0_152 = arith.constant 0 : index
      %c0_153 = arith.constant 0 : index
      %273 = vector.load %arg9[%c0_152, %c0_153] : memref<2x32xf32, #tpu.memory_space<vmem>>, vector<2x32xf32>
      tpu.vector_store %arg9[%c0_152, %c0_153], %272 {strides = array<i32>} : memref<2x32xf32, #tpu.memory_space<vmem>>, vector<2x32xf32>,
    } else {
    }
    %c0 = arith.constant 0 : index
    %c0_1 = arith.constant 0 : index
    %c0_2 = arith.constant 0 : index
    %3 = vector.load %arg1[%c0, %c0_1, %c0_2] : memref<8x2x128xf32, #tpu.memory_space<vmem>>, vector<1x2x128xf32>
    %4 = vector.shape_cast %3 : vector<1x2x128xf32> to vector<2x128xf32>
    %c0_3 = arith.constant 0 : index
    %c0_4 = arith.constant 0 : index
    %5 = vector.load %arg8[%c0_3, %c0_4] : memref<2x32xf32, #tpu.memory_space<vmem>>, vector<2x32xf32>
    %c0_5 = arith.constant 0 : index
    %c0_6 = arith.constant 0 : index
    %6 = vector.load %arg2[%c0_5, %c0_6] : memref<32x128xf32, #tpu.memory_space<vmem>>, vector<32x128xf32>
    %cst = arith.constant dense<0.000000e+00> : vector<2x128xf32>
    %7 = tpu.matmul %5, %6, %cst {dimension_numbers = #tpu.dot_dimension_numbers<[1], [0], [0], [1], [0, 0, 1, 1], [], []>} : vector<2x32xf32>, vector<32x128xf32>, vector<2x128xf32> -> vector<2x128xf32>
    %8 = arith.addf %4, %7 : vector<2x128xf32>
    %9 = vector.extract_strided_slice %8 {offsets = [0, 0], sizes = [2, 64], strides = [1, 1]} : vector<2x128xf32> to vector<2x64xf32>
    %10 = arith.negf %9 : vector<2x64xf32>
    %11 = math.exp %10 : vector<2x64xf32>
    %cst_7 = arith.constant 1.000000e+00 : f32
    %12 = vector.broadcast %cst_7 : f32 to vector<2x64xf32>
    %13 = arith.addf %12, %11 : vector<2x64xf32>
    %14 = arith.divf %12, %13 : vector<2x64xf32>
    %15 = vector.extract_strided_slice %14 {offsets = [0, 0], sizes = [2, 32], strides = [1, 1]} : vector<2x64xf32> to vector<2x32xf32>
    %16 = vector.extract_strided_slice %14 {offsets = [0, 32], sizes = [2, 32], strides = [1, 1]} : vector<2x64xf32> to vector<2x32xf32>
    %17 = vector.extract_strided_slice %8 {offsets = [0, 64], sizes = [2, 32], strides = [1, 1]} : vector<2x128xf32> to vector<2x32xf32>
    %18 = math.tanh %17 : vector<2x32xf32>
    %19 = vector.extract_strided_slice %8 {offsets = [0, 96], sizes = [2, 32], strides = [1, 1]} : vector<2x128xf32> to vector<2x32xf32>
    %20 = arith.negf %19 : vector<2x32xf32>
    %21 = math.exp %20 : vector<2x32xf32>
    %cst_8 = arith.constant 1.000000e+00 : f32
    %22 = vector.broadcast %cst_8 : f32 to vector<2x32xf32>
    %23 = arith.addf %22, %21 : vector<2x32xf32>
    %24 = arith.divf %22, %23 : vector<2x32xf32>
    %c0_9 = arith.constant 0 : index
    %c0_10 = arith.constant 0 : index
    %25 = vector.load %arg9[%c0_9, %c0_10] : memref<2x32xf32, #tpu.memory_space<vmem>>, vector<2x32xf32>
    %26 = arith.mulf %16, %25 : vector<2x32xf32>
    %27 = arith.mulf %15, %18 : vector<2x32xf32>
    %28 = arith.addf %26, %27 : vector<2x32xf32>
    %29 = math.tanh %28 : vector<2x32xf32>
    %30 = arith.mulf %24, %29 : vector<2x32xf32>
    %c0_11 = arith.constant 0 : index
    %c0_12 = arith.constant 0 : index
    %31 = vector.load %arg9[%c0_11, %c0_12] : memref<2x32xf32, #tpu.memory_space<vmem>>, vector<2x32xf32>
    tpu.vector_store %arg9[%c0_11, %c0_12], %28 {strides = array<i32>} : memref<2x32xf32, #tpu.memory_space<vmem>>, vector<2x32xf32>,
    %c0_13 = arith.constant 0 : index
    %c0_14 = arith.constant 0 : index
    %32 = vector.load %arg8[%c0_13, %c0_14] : memref<2x32xf32, #tpu.memory_space<vmem>>, vector<2x32xf32>
    tpu.vector_store %arg8[%c0_13, %c0_14], %30 {strides = array<i32>} : memref<2x32xf32, #tpu.memory_space<vmem>>, vector<2x32xf32>,
    %c0_15 = arith.constant 0 : index
    %c0_16 = arith.constant 0 : index
    %c0_17 = arith.constant 0 : index
    %33 = vector.load %arg5[%c0_15, %c0_16, %c0_17] : memref<8x2x32xf32, #tpu.memory_space<vmem>>, vector<1x2x32xf32>
    %34 = vector.shape_cast %33 : vector<1x2x32xf32> to vector<2x32xf32>
    %35 = vector.shape_cast %30 : vector<2x32xf32> to vector<1x2x32xf32>
    tpu.vector_store %arg5[%c0_15, %c0_16, %c0_17], %35 {strides = array<i32>} : memref<8x2x32xf32, #tpu.memory_space<vmem>>, vector<1x2x32xf32>,
    %c1 = arith.constant 1 : index
    %c0_18 = arith.constant 0 : index
    %c0_19 = arith.constant 0 : index
    %36 = vector.load %arg1[%c1, %c0_18, %c0_19] : memref<8x2x128xf32, #tpu.memory_space<vmem>>, vector<1x2x128xf32>
    %37 = vector.shape_cast %36 : vector<1x2x128xf32> to vector<2x128xf32>
    %c0_20 = arith.constant 0 : index
    %c0_21 = arith.constant 0 : index
    %38 = vector.load %arg8[%c0_20, %c0_21] : memref<2x32xf32, #tpu.memory_space<vmem>>, vector<2x32xf32>
    %c0_22 = arith.constant 0 : index
    %c0_23 = arith.constant 0 : index
    %39 = vector.load %arg2[%c0_22, %c0_23] : memref<32x128xf32, #tpu.memory_space<vmem>>, vector<32x128xf32>
    %cst_24 = arith.constant dense<0.000000e+00> : vector<2x128xf32>
    %40 = tpu.matmul %38, %39, %cst_24 {dimension_numbers = #tpu.dot_dimension_numbers<[1], [0], [0], [1], [0, 0, 1, 1], [], []>} : vector<2x32xf32>, vector<32x128xf32>, vector<2x128xf32> -> vector<2x128xf32>
    %41 = arith.addf %37, %40 : vector<2x128xf32>
    %42 = vector.extract_strided_slice %41 {offsets = [0, 0], sizes = [2, 64], strides = [1, 1]} : vector<2x128xf32> to vector<2x64xf32>
    %43 = arith.negf %42 : vector<2x64xf32>
    %44 = math.exp %43 : vector<2x64xf32>
    %cst_25 = arith.constant 1.000000e+00 : f32
    %45 = vector.broadcast %cst_25 : f32 to vector<2x64xf32>
    %46 = arith.addf %45, %44 : vector<2x64xf32>
    %47 = arith.divf %45, %46 : vector<2x64xf32>
    %48 = vector.extract_strided_slice %47 {offsets = [0, 0], sizes = [2, 32], strides = [1, 1]} : vector<2x64xf32> to vector<2x32xf32>
    %49 = vector.extract_strided_slice %47 {offsets = [0, 32], sizes = [2, 32], strides = [1, 1]} : vector<2x64xf32> to vector<2x32xf32>
    %50 = vector.extract_strided_slice %41 {offsets = [0, 64], sizes = [2, 32], strides = [1, 1]} : vector<2x128xf32> to vector<2x32xf32>
    %51 = math.tanh %50 : vector<2x32xf32>
    %52 = vector.extract_strided_slice %41 {offsets = [0, 96], sizes = [2, 32], strides = [1, 1]} : vector<2x128xf32> to vector<2x32xf32>
    %53 = arith.negf %52 : vector<2x32xf32>
    %54 = math.exp %53 : vector<2x32xf32>
    %cst_26 = arith.constant 1.000000e+00 : f32
    %55 = vector.broadcast %cst_26 : f32 to vector<2x32xf32>
    %56 = arith.addf %55, %54 : vector<2x32xf32>
    %57 = arith.divf %55, %56 : vector<2x32xf32>
    %c0_27 = arith.constant 0 : index
    %c0_28 = arith.constant 0 : index
    %58 = vector.load %arg9[%c0_27, %c0_28] : memref<2x32xf32, #tpu.memory_space<vmem>>, vector<2x32xf32>
    %59 = arith.mulf %49, %58 : vector<2x32xf32>
    %60 = arith.mulf %48, %51 : vector<2x32xf32>
    %61 = arith.addf %59, %60 : vector<2x32xf32>
    %62 = math.tanh %61 : vector<2x32xf32>
    %63 = arith.mulf %57, %62 : vector<2x32xf32>
    %c0_29 = arith.constant 0 : index
    %c0_30 = arith.constant 0 : index
    %64 = vector.load %arg9[%c0_29, %c0_30] : memref<2x32xf32, #tpu.memory_space<vmem>>, vector<2x32xf32>
    tpu.vector_store %arg9[%c0_29, %c0_30], %61 {strides = array<i32>} : memref<2x32xf32, #tpu.memory_space<vmem>>, vector<2x32xf32>,
    %c0_31 = arith.constant 0 : index
    %c0_32 = arith.constant 0 : index
    %65 = vector.load %arg8[%c0_31, %c0_32] : memref<2x32xf32, #tpu.memory_space<vmem>>, vector<2x32xf32>
    tpu.vector_store %arg8[%c0_31, %c0_32], %63 {strides = array<i32>} : memref<2x32xf32, #tpu.memory_space<vmem>>, vector<2x32xf32>,
    %c1_33 = arith.constant 1 : index
    %c0_34 = arith.constant 0 : index
    %c0_35 = arith.constant 0 : index
    %66 = vector.load %arg5[%c1_33, %c0_34, %c0_35] : memref<8x2x32xf32, #tpu.memory_space<vmem>>, vector<1x2x32xf32>
    %67 = vector.shape_cast %66 : vector<1x2x32xf32> to vector<2x32xf32>
    %68 = vector.shape_cast %63 : vector<2x32xf32> to vector<1x2x32xf32>
    tpu.vector_store %arg5[%c1_33, %c0_34, %c0_35], %68 {strides = array<i32>} : memref<8x2x32xf32, #tpu.memory_space<vmem>>, vector<1x2x32xf32>,
    %c2 = arith.constant 2 : index
    %c0_36 = arith.constant 0 : index
    %c0_37 = arith.constant 0 : index
    %69 = vector.load %arg1[%c2, %c0_36, %c0_37] : memref<8x2x128xf32, #tpu.memory_space<vmem>>, vector<1x2x128xf32>
    %70 = vector.shape_cast %69 : vector<1x2x128xf32> to vector<2x128xf32>
    %c0_38 = arith.constant 0 : index
    %c0_39 = arith.constant 0 : index
    %71 = vector.load %arg8[%c0_38, %c0_39] : memref<2x32xf32, #tpu.memory_space<vmem>>, vector<2x32xf32>
    %c0_40 = arith.constant 0 : index
    %c0_41 = arith.constant 0 : index
    %72 = vector.load %arg2[%c0_40, %c0_41] : memref<32x128xf32, #tpu.memory_space<vmem>>, vector<32x128xf32>
    %cst_42 = arith.constant dense<0.000000e+00> : vector<2x128xf32>
    %73 = tpu.matmul %71, %72, %cst_42 {dimension_numbers = #tpu.dot_dimension_numbers<[1], [0], [0], [1], [0, 0, 1, 1], [], []>} : vector<2x32xf32>, vector<32x128xf32>, vector<2x128xf32> -> vector<2x128xf32>
    %74 = arith.addf %70, %73 : vector<2x128xf32>
    %75 = vector.extract_strided_slice %74 {offsets = [0, 0], sizes = [2, 64], strides = [1, 1]} : vector<2x128xf32> to vector<2x64xf32>
    %76 = arith.negf %75 : vector<2x64xf32>
    %77 = math.exp %76 : vector<2x64xf32>
    %cst_43 = arith.constant 1.000000e+00 : f32
    %78 = vector.broadcast %cst_43 : f32 to vector<2x64xf32>
    %79 = arith.addf %78, %77 : vector<2x64xf32>
    %80 = arith.divf %78, %79 : vector<2x64xf32>
    %81 = vector.extract_strided_slice %80 {offsets = [0, 0], sizes = [2, 32], strides = [1, 1]} : vector<2x64xf32> to vector<2x32xf32>
    %82 = vector.extract_strided_slice %80 {offsets = [0, 32], sizes = [2, 32], strides = [1, 1]} : vector<2x64xf32> to vector<2x32xf32>
    %83 = vector.extract_strided_slice %74 {offsets = [0, 64], sizes = [2, 32], strides = [1, 1]} : vector<2x128xf32> to vector<2x32xf32>
    %84 = math.tanh %83 : vector<2x32xf32>
    %85 = vector.extract_strided_slice %74 {offsets = [0, 96], sizes = [2, 32], strides = [1, 1]} : vector<2x128xf32> to vector<2x32xf32>
    %86 = arith.negf %85 : vector<2x32xf32>
    %87 = math.exp %86 : vector<2x32xf32>
    %cst_44 = arith.constant 1.000000e+00 : f32
    %88 = vector.broadcast %cst_44 : f32 to vector<2x32xf32>
    %89 = arith.addf %88, %87 : vector<2x32xf32>
    %90 = arith.divf %88, %89 : vector<2x32xf32>
    %c0_45 = arith.constant 0 : index
    %c0_46 = arith.constant 0 : index
    %91 = vector.load %arg9[%c0_45, %c0_46] : memref<2x32xf32, #tpu.memory_space<vmem>>, vector<2x32xf32>
    %92 = arith.mulf %82, %91 : vector<2x32xf32>
    %93 = arith.mulf %81, %84 : vector<2x32xf32>
    %94 = arith.addf %92, %93 : vector<2x32xf32>
    %95 = math.tanh %94 : vector<2x32xf32>
    %96 = arith.mulf %90, %95 : vector<2x32xf32>
    %c0_47 = arith.constant 0 : index
    %c0_48 = arith.constant 0 : index
    %97 = vector.load %arg9[%c0_47, %c0_48] : memref<2x32xf32, #tpu.memory_space<vmem>>, vector<2x32xf32>
    tpu.vector_store %arg9[%c0_47, %c0_48], %94 {strides = array<i32>} : memref<2x32xf32, #tpu.memory_space<vmem>>, vector<2x32xf32>,
    %c0_49 = arith.constant 0 : index
    %c0_50 = arith.constant 0 : index
    %98 = vector.load %arg8[%c0_49, %c0_50] : memref<2x32xf32, #tpu.memory_space<vmem>>, vector<2x32xf32>
    tpu.vector_store %arg8[%c0_49, %c0_50], %96 {strides = array<i32>} : memref<2x32xf32, #tpu.memory_space<vmem>>, vector<2x32xf32>,
    %c2_51 = arith.constant 2 : index
    %c0_52 = arith.constant 0 : index
    %c0_53 = arith.constant 0 : index
    %99 = vector.load %arg5[%c2_51, %c0_52, %c0_53] : memref<8x2x32xf32, #tpu.memory_space<vmem>>, vector<1x2x32xf32>
    %100 = vector.shape_cast %99 : vector<1x2x32xf32> to vector<2x32xf32>
    %101 = vector.shape_cast %96 : vector<2x32xf32> to vector<1x2x32xf32>
    tpu.vector_store %arg5[%c2_51, %c0_52, %c0_53], %101 {strides = array<i32>} : memref<8x2x32xf32, #tpu.memory_space<vmem>>, vector<1x2x32xf32>,
    %c3 = arith.constant 3 : index
    %c0_54 = arith.constant 0 : index
    %c0_55 = arith.constant 0 : index
    %102 = vector.load %arg1[%c3, %c0_54, %c0_55] : memref<8x2x128xf32, #tpu.memory_space<vmem>>, vector<1x2x128xf32>
    %103 = vector.shape_cast %102 : vector<1x2x128xf32> to vector<2x128xf32>
    %c0_56 = arith.constant 0 : index
    %c0_57 = arith.constant 0 : index
    %104 = vector.load %arg8[%c0_56, %c0_57] : memref<2x32xf32, #tpu.memory_space<vmem>>, vector<2x32xf32>
    %c0_58 = arith.constant 0 : index
    %c0_59 = arith.constant 0 : index
    %105 = vector.load %arg2[%c0_58, %c0_59] : memref<32x128xf32, #tpu.memory_space<vmem>>, vector<32x128xf32>
    %cst_60 = arith.constant dense<0.000000e+00> : vector<2x128xf32>
    %106 = tpu.matmul %104, %105, %cst_60 {dimension_numbers = #tpu.dot_dimension_numbers<[1], [0], [0], [1], [0, 0, 1, 1], [], []>} : vector<2x32xf32>, vector<32x128xf32>, vector<2x128xf32> -> vector<2x128xf32>
    %107 = arith.addf %103, %106 : vector<2x128xf32>
    %108 = vector.extract_strided_slice %107 {offsets = [0, 0], sizes = [2, 64], strides = [1, 1]} : vector<2x128xf32> to vector<2x64xf32>
    %109 = arith.negf %108 : vector<2x64xf32>
    %110 = math.exp %109 : vector<2x64xf32>
    %cst_61 = arith.constant 1.000000e+00 : f32
    %111 = vector.broadcast %cst_61 : f32 to vector<2x64xf32>
    %112 = arith.addf %111, %110 : vector<2x64xf32>
    %113 = arith.divf %111, %112 : vector<2x64xf32>
    %114 = vector.extract_strided_slice %113 {offsets = [0, 0], sizes = [2, 32], strides = [1, 1]} : vector<2x64xf32> to vector<2x32xf32>
    %115 = vector.extract_strided_slice %113 {offsets = [0, 32], sizes = [2, 32], strides = [1, 1]} : vector<2x64xf32> to vector<2x32xf32>
    %116 = vector.extract_strided_slice %107 {offsets = [0, 64], sizes = [2, 32], strides = [1, 1]} : vector<2x128xf32> to vector<2x32xf32>
    %117 = math.tanh %116 : vector<2x32xf32>
    %118 = vector.extract_strided_slice %107 {offsets = [0, 96], sizes = [2, 32], strides = [1, 1]} : vector<2x128xf32> to vector<2x32xf32>
    %119 = arith.negf %118 : vector<2x32xf32>
    %120 = math.exp %119 : vector<2x32xf32>
    %cst_62 = arith.constant 1.000000e+00 : f32
    %121 = vector.broadcast %cst_62 : f32 to vector<2x32xf32>
    %122 = arith.addf %121, %120 : vector<2x32xf32>
    %123 = arith.divf %121, %122 : vector<2x32xf32>
    %c0_63 = arith.constant 0 : index
    %c0_64 = arith.constant 0 : index
    %124 = vector.load %arg9[%c0_63, %c0_64] : memref<2x32xf32, #tpu.memory_space<vmem>>, vector<2x32xf32>
    %125 = arith.mulf %115, %124 : vector<2x32xf32>
    %126 = arith.mulf %114, %117 : vector<2x32xf32>
    %127 = arith.addf %125, %126 : vector<2x32xf32>
    %128 = math.tanh %127 : vector<2x32xf32>
    %129 = arith.mulf %123, %128 : vector<2x32xf32>
    %c0_65 = arith.constant 0 : index
    %c0_66 = arith.constant 0 : index
    %130 = vector.load %arg9[%c0_65, %c0_66] : memref<2x32xf32, #tpu.memory_space<vmem>>, vector<2x32xf32>
    tpu.vector_store %arg9[%c0_65, %c0_66], %127 {strides = array<i32>} : memref<2x32xf32, #tpu.memory_space<vmem>>, vector<2x32xf32>,
    %c0_67 = arith.constant 0 : index
    %c0_68 = arith.constant 0 : index
    %131 = vector.load %arg8[%c0_67, %c0_68] : memref<2x32xf32, #tpu.memory_space<vmem>>, vector<2x32xf32>
    tpu.vector_store %arg8[%c0_67, %c0_68], %129 {strides = array<i32>} : memref<2x32xf32, #tpu.memory_space<vmem>>, vector<2x32xf32>,
    %c3_69 = arith.constant 3 : index
    %c0_70 = arith.constant 0 : index
    %c0_71 = arith.constant 0 : index
    %132 = vector.load %arg5[%c3_69, %c0_70, %c0_71] : memref<8x2x32xf32, #tpu.memory_space<vmem>>, vector<1x2x32xf32>
    %133 = vector.shape_cast %132 : vector<1x2x32xf32> to vector<2x32xf32>
    %134 = vector.shape_cast %129 : vector<2x32xf32> to vector<1x2x32xf32>
    tpu.vector_store %arg5[%c3_69, %c0_70, %c0_71], %134 {strides = array<i32>} : memref<8x2x32xf32, #tpu.memory_space<vmem>>, vector<1x2x32xf32>,
    %c4 = arith.constant 4 : index
    %c0_72 = arith.constant 0 : index
    %c0_73 = arith.constant 0 : index
    %135 = vector.load %arg1[%c4, %c0_72, %c0_73] : memref<8x2x128xf32, #tpu.memory_space<vmem>>, vector<1x2x128xf32>
    %136 = vector.shape_cast %135 : vector<1x2x128xf32> to vector<2x128xf32>
    %c0_74 = arith.constant 0 : index
    %c0_75 = arith.constant 0 : index
    %137 = vector.load %arg8[%c0_74, %c0_75] : memref<2x32xf32, #tpu.memory_space<vmem>>, vector<2x32xf32>
    %c0_76 = arith.constant 0 : index
    %c0_77 = arith.constant 0 : index
    %138 = vector.load %arg2[%c0_76, %c0_77] : memref<32x128xf32, #tpu.memory_space<vmem>>, vector<32x128xf32>
    %cst_78 = arith.constant dense<0.000000e+00> : vector<2x128xf32>
    %139 = tpu.matmul %137, %138, %cst_78 {dimension_numbers = #tpu.dot_dimension_numbers<[1], [0], [0], [1], [0, 0, 1, 1], [], []>} : vector<2x32xf32>, vector<32x128xf32>, vector<2x128xf32> -> vector<2x128xf32>
    %140 = arith.addf %136, %139 : vector<2x128xf32>
    %141 = vector.extract_strided_slice %140 {offsets = [0, 0], sizes = [2, 64], strides = [1, 1]} : vector<2x128xf32> to vector<2x64xf32>
    %142 = arith.negf %141 : vector<2x64xf32>
    %143 = math.exp %142 : vector<2x64xf32>
    %cst_79 = arith.constant 1.000000e+00 : f32
    %144 = vector.broadcast %cst_79 : f32 to vector<2x64xf32>
    %145 = arith.addf %144, %143 : vector<2x64xf32>
    %146 = arith.divf %144, %145 : vector<2x64xf32>
    %147 = vector.extract_strided_slice %146 {offsets = [0, 0], sizes = [2, 32], strides = [1, 1]} : vector<2x64xf32> to vector<2x32xf32>
    %148 = vector.extract_strided_slice %146 {offsets = [0, 32], sizes = [2, 32], strides = [1, 1]} : vector<2x64xf32> to vector<2x32xf32>
    %149 = vector.extract_strided_slice %140 {offsets = [0, 64], sizes = [2, 32], strides = [1, 1]} : vector<2x128xf32> to vector<2x32xf32>
    %150 = math.tanh %149 : vector<2x32xf32>
    %151 = vector.extract_strided_slice %140 {offsets = [0, 96], sizes = [2, 32], strides = [1, 1]} : vector<2x128xf32> to vector<2x32xf32>
    %152 = arith.negf %151 : vector<2x32xf32>
    %153 = math.exp %152 : vector<2x32xf32>
    %cst_80 = arith.constant 1.000000e+00 : f32
    %154 = vector.broadcast %cst_80 : f32 to vector<2x32xf32>
    %155 = arith.addf %154, %153 : vector<2x32xf32>
    %156 = arith.divf %154, %155 : vector<2x32xf32>
    %c0_81 = arith.constant 0 : index
    %c0_82 = arith.constant 0 : index
    %157 = vector.load %arg9[%c0_81, %c0_82] : memref<2x32xf32, #tpu.memory_space<vmem>>, vector<2x32xf32>
    %158 = arith.mulf %148, %157 : vector<2x32xf32>
    %159 = arith.mulf %147, %150 : vector<2x32xf32>
    %160 = arith.addf %158, %159 : vector<2x32xf32>
    %161 = math.tanh %160 : vector<2x32xf32>
    %162 = arith.mulf %156, %161 : vector<2x32xf32>
    %c0_83 = arith.constant 0 : index
    %c0_84 = arith.constant 0 : index
    %163 = vector.load %arg9[%c0_83, %c0_84] : memref<2x32xf32, #tpu.memory_space<vmem>>, vector<2x32xf32>
    tpu.vector_store %arg9[%c0_83, %c0_84], %160 {strides = array<i32>} : memref<2x32xf32, #tpu.memory_space<vmem>>, vector<2x32xf32>,
    %c0_85 = arith.constant 0 : index
    %c0_86 = arith.constant 0 : index
    %164 = vector.load %arg8[%c0_85, %c0_86] : memref<2x32xf32, #tpu.memory_space<vmem>>, vector<2x32xf32>
    tpu.vector_store %arg8[%c0_85, %c0_86], %162 {strides = array<i32>} : memref<2x32xf32, #tpu.memory_space<vmem>>, vector<2x32xf32>,
    %c4_87 = arith.constant 4 : index
    %c0_88 = arith.constant 0 : index
    %c0_89 = arith.constant 0 : index
    %165 = vector.load %arg5[%c4_87, %c0_88, %c0_89] : memref<8x2x32xf32, #tpu.memory_space<vmem>>, vector<1x2x32xf32>
    %166 = vector.shape_cast %165 : vector<1x2x32xf32> to vector<2x32xf32>
    %167 = vector.shape_cast %162 : vector<2x32xf32> to vector<1x2x32xf32>
    tpu.vector_store %arg5[%c4_87, %c0_88, %c0_89], %167 {strides = array<i32>} : memref<8x2x32xf32, #tpu.memory_space<vmem>>, vector<1x2x32xf32>,
    %c5 = arith.constant 5 : index
    %c0_90 = arith.constant 0 : index
    %c0_91 = arith.constant 0 : index
    %168 = vector.load %arg1[%c5, %c0_90, %c0_91] : memref<8x2x128xf32, #tpu.memory_space<vmem>>, vector<1x2x128xf32>
    %169 = vector.shape_cast %168 : vector<1x2x128xf32> to vector<2x128xf32>
    %c0_92 = arith.constant 0 : index
    %c0_93 = arith.constant 0 : index
    %170 = vector.load %arg8[%c0_92, %c0_93] : memref<2x32xf32, #tpu.memory_space<vmem>>, vector<2x32xf32>
    %c0_94 = arith.constant 0 : index
    %c0_95 = arith.constant 0 : index
    %171 = vector.load %arg2[%c0_94, %c0_95] : memref<32x128xf32, #tpu.memory_space<vmem>>, vector<32x128xf32>
    %cst_96 = arith.constant dense<0.000000e+00> : vector<2x128xf32>
    %172 = tpu.matmul %170, %171, %cst_96 {dimension_numbers = #tpu.dot_dimension_numbers<[1], [0], [0], [1], [0, 0, 1, 1], [], []>} : vector<2x32xf32>, vector<32x128xf32>, vector<2x128xf32> -> vector<2x128xf32>
    %173 = arith.addf %169, %172 : vector<2x128xf32>
    %174 = vector.extract_strided_slice %173 {offsets = [0, 0], sizes = [2, 64], strides = [1, 1]} : vector<2x128xf32> to vector<2x64xf32>
    %175 = arith.negf %174 : vector<2x64xf32>
    %176 = math.exp %175 : vector<2x64xf32>
    %cst_97 = arith.constant 1.000000e+00 : f32
    %177 = vector.broadcast %cst_97 : f32 to vector<2x64xf32>
    %178 = arith.addf %177, %176 : vector<2x64xf32>
    %179 = arith.divf %177, %178 : vector<2x64xf32>
    %180 = vector.extract_strided_slice %179 {offsets = [0, 0], sizes = [2, 32], strides = [1, 1]} : vector<2x64xf32> to vector<2x32xf32>
    %181 = vector.extract_strided_slice %179 {offsets = [0, 32], sizes = [2, 32], strides = [1, 1]} : vector<2x64xf32> to vector<2x32xf32>
    %182 = vector.extract_strided_slice %173 {offsets = [0, 64], sizes = [2, 32], strides = [1, 1]} : vector<2x128xf32> to vector<2x32xf32>
    %183 = math.tanh %182 : vector<2x32xf32>
    %184 = vector.extract_strided_slice %173 {offsets = [0, 96], sizes = [2, 32], strides = [1, 1]} : vector<2x128xf32> to vector<2x32xf32>
    %185 = arith.negf %184 : vector<2x32xf32>
    %186 = math.exp %185 : vector<2x32xf32>
    %cst_98 = arith.constant 1.000000e+00 : f32
    %187 = vector.broadcast %cst_98 : f32 to vector<2x32xf32>
    %188 = arith.addf %187, %186 : vector<2x32xf32>
    %189 = arith.divf %187, %188 : vector<2x32xf32>
    %c0_99 = arith.constant 0 : index
    %c0_100 = arith.constant 0 : index
    %190 = vector.load %arg9[%c0_99, %c0_100] : memref<2x32xf32, #tpu.memory_space<vmem>>, vector<2x32xf32>
    %191 = arith.mulf %181, %190 : vector<2x32xf32>
    %192 = arith.mulf %180, %183 : vector<2x32xf32>
    %193 = arith.addf %191, %192 : vector<2x32xf32>
    %194 = math.tanh %193 : vector<2x32xf32>
    %195 = arith.mulf %189, %194 : vector<2x32xf32>
    %c0_101 = arith.constant 0 : index
    %c0_102 = arith.constant 0 : index
    %196 = vector.load %arg9[%c0_101, %c0_102] : memref<2x32xf32, #tpu.memory_space<vmem>>, vector<2x32xf32>
    tpu.vector_store %arg9[%c0_101, %c0_102], %193 {strides = array<i32>} : memref<2x32xf32, #tpu.memory_space<vmem>>, vector<2x32xf32>,
    %c0_103 = arith.constant 0 : index
    %c0_104 = arith.constant 0 : index
    %197 = vector.load %arg8[%c0_103, %c0_104] : memref<2x32xf32, #tpu.memory_space<vmem>>, vector<2x32xf32>
    tpu.vector_store %arg8[%c0_103, %c0_104], %195 {strides = array<i32>} : memref<2x32xf32, #tpu.memory_space<vmem>>, vector<2x32xf32>,
    %c5_105 = arith.constant 5 : index
    %c0_106 = arith.constant 0 : index
    %c0_107 = arith.constant 0 : index
    %198 = vector.load %arg5[%c5_105, %c0_106, %c0_107] : memref<8x2x32xf32, #tpu.memory_space<vmem>>, vector<1x2x32xf32>
    %199 = vector.shape_cast %198 : vector<1x2x32xf32> to vector<2x32xf32>
    %200 = vector.shape_cast %195 : vector<2x32xf32> to vector<1x2x32xf32>
    tpu.vector_store %arg5[%c5_105, %c0_106, %c0_107], %200 {strides = array<i32>} : memref<8x2x32xf32, #tpu.memory_space<vmem>>, vector<1x2x32xf32>,
    %c6 = arith.constant 6 : index
    %c0_108 = arith.constant 0 : index
    %c0_109 = arith.constant 0 : index
    %201 = vector.load %arg1[%c6, %c0_108, %c0_109] : memref<8x2x128xf32, #tpu.memory_space<vmem>>, vector<1x2x128xf32>
    %202 = vector.shape_cast %201 : vector<1x2x128xf32> to vector<2x128xf32>
    %c0_110 = arith.constant 0 : index
    %c0_111 = arith.constant 0 : index
    %203 = vector.load %arg8[%c0_110, %c0_111] : memref<2x32xf32, #tpu.memory_space<vmem>>, vector<2x32xf32>
    %c0_112 = arith.constant 0 : index
    %c0_113 = arith.constant 0 : index
    %204 = vector.load %arg2[%c0_112, %c0_113] : memref<32x128xf32, #tpu.memory_space<vmem>>, vector<32x128xf32>
    %cst_114 = arith.constant dense<0.000000e+00> : vector<2x128xf32>
    %205 = tpu.matmul %203, %204, %cst_114 {dimension_numbers = #tpu.dot_dimension_numbers<[1], [0], [0], [1], [0, 0, 1, 1], [], []>} : vector<2x32xf32>, vector<32x128xf32>, vector<2x128xf32> -> vector<2x128xf32>
    %206 = arith.addf %202, %205 : vector<2x128xf32>
    %207 = vector.extract_strided_slice %206 {offsets = [0, 0], sizes = [2, 64], strides = [1, 1]} : vector<2x128xf32> to vector<2x64xf32>
    %208 = arith.negf %207 : vector<2x64xf32>
    %209 = math.exp %208 : vector<2x64xf32>
    %cst_115 = arith.constant 1.000000e+00 : f32
    %210 = vector.broadcast %cst_115 : f32 to vector<2x64xf32>
    %211 = arith.addf %210, %209 : vector<2x64xf32>
    %212 = arith.divf %210, %211 : vector<2x64xf32>
    %213 = vector.extract_strided_slice %212 {offsets = [0, 0], sizes = [2, 32], strides = [1, 1]} : vector<2x64xf32> to vector<2x32xf32>
    %214 = vector.extract_strided_slice %212 {offsets = [0, 32], sizes = [2, 32], strides = [1, 1]} : vector<2x64xf32> to vector<2x32xf32>
    %215 = vector.extract_strided_slice %206 {offsets = [0, 64], sizes = [2, 32], strides = [1, 1]} : vector<2x128xf32> to vector<2x32xf32>
    %216 = math.tanh %215 : vector<2x32xf32>
    %217 = vector.extract_strided_slice %206 {offsets = [0, 96], sizes = [2, 32], strides = [1, 1]} : vector<2x128xf32> to vector<2x32xf32>
    %218 = arith.negf %217 : vector<2x32xf32>
    %219 = math.exp %218 : vector<2x32xf32>
    %cst_116 = arith.constant 1.000000e+00 : f32
    %220 = vector.broadcast %cst_116 : f32 to vector<2x32xf32>
    %221 = arith.addf %220, %219 : vector<2x32xf32>
    %222 = arith.divf %220, %221 : vector<2x32xf32>
    %c0_117 = arith.constant 0 : index
    %c0_118 = arith.constant 0 : index
    %223 = vector.load %arg9[%c0_117, %c0_118] : memref<2x32xf32, #tpu.memory_space<vmem>>, vector<2x32xf32>
    %224 = arith.mulf %214, %223 : vector<2x32xf32>
    %225 = arith.mulf %213, %216 : vector<2x32xf32>
    %226 = arith.addf %224, %225 : vector<2x32xf32>
    %227 = math.tanh %226 : vector<2x32xf32>
    %228 = arith.mulf %222, %227 : vector<2x32xf32>
    %c0_119 = arith.constant 0 : index
    %c0_120 = arith.constant 0 : index
    %229 = vector.load %arg9[%c0_119, %c0_120] : memref<2x32xf32, #tpu.memory_space<vmem>>, vector<2x32xf32>
    tpu.vector_store %arg9[%c0_119, %c0_120], %226 {strides = array<i32>} : memref<2x32xf32, #tpu.memory_space<vmem>>, vector<2x32xf32>,
    %c0_121 = arith.constant 0 : index
    %c0_122 = arith.constant 0 : index
    %230 = vector.load %arg8[%c0_121, %c0_122] : memref<2x32xf32, #tpu.memory_space<vmem>>, vector<2x32xf32>
    tpu.vector_store %arg8[%c0_121, %c0_122], %228 {strides = array<i32>} : memref<2x32xf32, #tpu.memory_space<vmem>>, vector<2x32xf32>,
    %c6_123 = arith.constant 6 : index
    %c0_124 = arith.constant 0 : index
    %c0_125 = arith.constant 0 : index
    %231 = vector.load %arg5[%c6_123, %c0_124, %c0_125] : memref<8x2x32xf32, #tpu.memory_space<vmem>>, vector<1x2x32xf32>
    %232 = vector.shape_cast %231 : vector<1x2x32xf32> to vector<2x32xf32>
    %233 = vector.shape_cast %228 : vector<2x32xf32> to vector<1x2x32xf32>
    tpu.vector_store %arg5[%c6_123, %c0_124, %c0_125], %233 {strides = array<i32>} : memref<8x2x32xf32, #tpu.memory_space<vmem>>, vector<1x2x32xf32>,
    %c7 = arith.constant 7 : index
    %c0_126 = arith.constant 0 : index
    %c0_127 = arith.constant 0 : index
    %234 = vector.load %arg1[%c7, %c0_126, %c0_127] : memref<8x2x128xf32, #tpu.memory_space<vmem>>, vector<1x2x128xf32>
    %235 = vector.shape_cast %234 : vector<1x2x128xf32> to vector<2x128xf32>
    %c0_128 = arith.constant 0 : index
    %c0_129 = arith.constant 0 : index
    %236 = vector.load %arg8[%c0_128, %c0_129] : memref<2x32xf32, #tpu.memory_space<vmem>>, vector<2x32xf32>
    %c0_130 = arith.constant 0 : index
    %c0_131 = arith.constant 0 : index
    %237 = vector.load %arg2[%c0_130, %c0_131] : memref<32x128xf32, #tpu.memory_space<vmem>>, vector<32x128xf32>
    %cst_132 = arith.constant dense<0.000000e+00> : vector<2x128xf32>
    %238 = tpu.matmul %236, %237, %cst_132 {dimension_numbers = #tpu.dot_dimension_numbers<[1], [0], [0], [1], [0, 0, 1, 1], [], []>} : vector<2x32xf32>, vector<32x128xf32>, vector<2x128xf32> -> vector<2x128xf32>
    %239 = arith.addf %235, %238 : vector<2x128xf32>
    %240 = vector.extract_strided_slice %239 {offsets = [0, 0], sizes = [2, 64], strides = [1, 1]} : vector<2x128xf32> to vector<2x64xf32>
    %241 = arith.negf %240 : vector<2x64xf32>
    %242 = math.exp %241 : vector<2x64xf32>
    %cst_133 = arith.constant 1.000000e+00 : f32
    %243 = vector.broadcast %cst_133 : f32 to vector<2x64xf32>
    %244 = arith.addf %243, %242 : vector<2x64xf32>
    %245 = arith.divf %243, %244 : vector<2x64xf32>
    %246 = vector.extract_strided_slice %245 {offsets = [0, 0], sizes = [2, 32], strides = [1, 1]} : vector<2x64xf32> to vector<2x32xf32>
    %247 = vector.extract_strided_slice %245 {offsets = [0, 32], sizes = [2, 32], strides = [1, 1]} : vector<2x64xf32> to vector<2x32xf32>
    %248 = vector.extract_strided_slice %239 {offsets = [0, 64], sizes = [2, 32], strides = [1, 1]} : vector<2x128xf32> to vector<2x32xf32>
    %249 = math.tanh %248 : vector<2x32xf32>
    %250 = vector.extract_strided_slice %239 {offsets = [0, 96], sizes = [2, 32], strides = [1, 1]} : vector<2x128xf32> to vector<2x32xf32>
    %251 = arith.negf %250 : vector<2x32xf32>
    %252 = math.exp %251 : vector<2x32xf32>
    %cst_134 = arith.constant 1.000000e+00 : f32
    %253 = vector.broadcast %cst_134 : f32 to vector<2x32xf32>
    %254 = arith.addf %253, %252 : vector<2x32xf32>
    %255 = arith.divf %253, %254 : vector<2x32xf32>
    %c0_135 = arith.constant 0 : index
    %c0_136 = arith.constant 0 : index
    %256 = vector.load %arg9[%c0_135, %c0_136] : memref<2x32xf32, #tpu.memory_space<vmem>>, vector<2x32xf32>
    %257 = arith.mulf %247, %256 : vector<2x32xf32>
    %258 = arith.mulf %246, %249 : vector<2x32xf32>
    %259 = arith.addf %257, %258 : vector<2x32xf32>
    %260 = math.tanh %259 : vector<2x32xf32>
    %261 = arith.mulf %255, %260 : vector<2x32xf32>
    %c0_137 = arith.constant 0 : index
    %c0_138 = arith.constant 0 : index
    %262 = vector.load %arg9[%c0_137, %c0_138] : memref<2x32xf32, #tpu.memory_space<vmem>>, vector<2x32xf32>
    tpu.vector_store %arg9[%c0_137, %c0_138], %259 {strides = array<i32>} : memref<2x32xf32, #tpu.memory_space<vmem>>, vector<2x32xf32>,
    %c0_139 = arith.constant 0 : index
    %c0_140 = arith.constant 0 : index
    %263 = vector.load %arg8[%c0_139, %c0_140] : memref<2x32xf32, #tpu.memory_space<vmem>>, vector<2x32xf32>
    tpu.vector_store %arg8[%c0_139, %c0_140], %261 {strides = array<i32>} : memref<2x32xf32, #tpu.memory_space<vmem>>, vector<2x32xf32>,
    %c7_141 = arith.constant 7 : index
    %c0_142 = arith.constant 0 : index
    %c0_143 = arith.constant 0 : index
    %264 = vector.load %arg5[%c7_141, %c0_142, %c0_143] : memref<8x2x32xf32, #tpu.memory_space<vmem>>, vector<1x2x32xf32>
    %265 = vector.shape_cast %264 : vector<1x2x32xf32> to vector<2x32xf32>
    %266 = vector.shape_cast %261 : vector<2x32xf32> to vector<1x2x32xf32>
    tpu.vector_store %arg5[%c7_141, %c0_142, %c0_143], %266 {strides = array<i32>} : memref<8x2x32xf32, #tpu.memory_space<vmem>>, vector<1x2x32xf32>,
    %c0_i32_144 = arith.constant 0 : i32
    %267 = arith.cmpi eq, %arg0, %c0_i32_144 : i32
    %268 = arith.extui %267 : i1 to i32
    %c0_i32_145 = arith.constant 0 : i32
    %269 = arith.cmpi ne, %268, %c0_i32_145 : i32
    scf.if %269 {
      %c0_146 = arith.constant 0 : index
      %c0_147 = arith.constant 0 : index
      %270 = vector.load %arg8[%c0_146, %c0_147] : memref<2x32xf32, #tpu.memory_space<vmem>>, vector<2x32xf32>
      %c0_148 = arith.constant 0 : index
      %c0_149 = arith.constant 0 : index
      %271 = vector.load %arg6[%c0_148, %c0_149] : memref<2x32xf32, #tpu.memory_space<vmem>>, vector<2x32xf32>
      tpu.vector_store %arg6[%c0_148, %c0_149], %270 {strides = array<i32>} : memref<2x32xf32, #tpu.memory_space<vmem>>, vector<2x32xf32>,
      %c0_150 = arith.constant 0 : index
      %c0_151 = arith.constant 0 : index
      %272 = vector.load %arg9[%c0_150, %c0_151] : memref<2x32xf32, #tpu.memory_space<vmem>>, vector<2x32xf32>
      %c0_152 = arith.constant 0 : index
      %c0_153 = arith.constant 0 : index
      %273 = vector.load %arg7[%c0_152, %c0_153] : memref<2x32xf32, #tpu.memory_space<vmem>>, vector<2x32xf32>
      tpu.vector_store %arg7[%c0_152, %c0_153], %272 {strides = array<i32>} : memref<2x32xf32, #tpu.memory_space<vmem>>, vector<2x32xf32>,
    } else {
    }
    return
  }
  func.func @transform_0(%arg0: i32) -> (i32, i32, i32) {
    %c0_i32 = arith.constant 0 : i32
    %c0_i32_0 = arith.constant 0 : i32
    %c0_i32_1 = arith.constant 0 : i32
    return %arg0, %c0_i32, %c0_i32_0 : i32, i32, i32
  }
  func.func @transform_1(%arg0: i32) -> (i32, i32) {
    %c0_i32 = arith.constant 0 : i32
    %c0_i32_0 = arith.constant 0 : i32
    %c0_i32_1 = arith.constant 0 : i32
    return %c0_i32, %c0_i32_0 : i32, i32
  }
  func.func @transform_2(%arg0: i32) -> (i32, i32) {
    %c0_i32 = arith.constant 0 : i32
    %c0_i32_0 = arith.constant 0 : i32
    %c0_i32_1 = arith.constant 0 : i32
    return %c0_i32, %c0_i32_0 : i32, i32
  }
  func.func @transform_3(%arg0: i32) -> (i32, i32) {
    %c0_i32 = arith.constant 0 : i32
    %c0_i32_0 = arith.constant 0 : i32
    %c0_i32_1 = arith.constant 0 : i32
    return %c0_i32, %c0_i32_0 : i32, i32
  }
  func.func @transform_4(%arg0: i32) -> (i32, i32, i32) {
    %c0_i32 = arith.constant 0 : i32
    %c0_i32_0 = arith.constant 0 : i32
    %c0_i32_1 = arith.constant 0 : i32
    return %arg0, %c0_i32, %c0_i32_0 : i32, i32, i32
  }
  func.func @transform_5(%arg0: i32) -> (i32, i32) {
    %c0_i32 = arith.constant 0 : i32
    %c0_i32_0 = arith.constant 0 : i32
    %c0_i32_1 = arith.constant 0 : i32
    return %c0_i32, %c0_i32_0 : i32, i32
  }
  func.func @transform_6(%arg0: i32) -> (i32, i32) {
    %c0_i32 = arith.constant 0 : i32
    %c0_i32_0 = arith.constant 0 : i32
    %c0_i32_1 = arith.constant 0 : i32
    return %c0_i32, %c0_i32_0 : i32, i32
  }
}

</mosaic_0001>

<bundles_post_ra>
// kernel: lstm_pr_forward.5
= control target key start
LH: loop header
LB: loop body
LE: loop exit
PB: predicated region body
PF: predicated region fallthrough
CT: control target
= control target key end

     0   :  { %vm25_vm0 = vcmask 130048   ;;  %s172_s1 = inlined_call_operand.vmem [shape: f32[16,128], index: 1, kind: input, shape index: {}]   ;;  %s173_s0 = inlined_call_operand.vmem [shape: f32[16,16], index: 0, kind: input, shape index: {}]   ;;  %s174_s2 = inlined_call_operand.vmem [shape: f32[1,128], index: 2, kind: input, shape index: {}]   ;;  %s175_s3 = inlined_call_operand.vmem [shape: f32[16,128], index: 3, kind: output, shape index: {}]  }
   0x1   :  { %v16_v0 = vld [vmem:[%s172_s1] sm:$0xff]  ;;  %v17_v1 = vld [vmem:[%s172_s1 + $0x8] sm:$0xff] }
   0x2   :  { %v14_v2 = vld [vmem:[%s173_s0] sm:$0xff]  ;;  %v127_v3 = vpack.c.bf16 %v17_v1, %v16_v0  ;;  %v15_v4 = vld [vmem:[%s173_s0 + $0x8] sm:$0xff] }
   0x3   :  { %124 = vmatprep.mubr.msk.f32.mxu0 %vm25_vm0, %v14_v2  ;;  %v113_v5 = vld [vmem:[%s174_s2] ss:$0 sm:$0xff] }
   0x4   :  { %128 = vmatprep.subr.bf16.mxu0 %v127_v3 }
   0x5   :  { %130 = vmatpush3.bf16.msra.mxu0 %v127_v3 }
   0x8   :  { %125 = vmatmul.mubr.msk.f32.vlgmr.msra.gmra.mrb[0].mxu0 %vm25_vm0, %v15_v4 }
  0xdb   :  { %v126_v6 = vpop.f32.mrb[0].mxu0 }
  0xdc   :  { %v104_v7 = vadd.f32 %v126_v6, %v113_v5  ;;  %v98_v8 = vpop.f32.mrb[1].mxu0 }
  0xdd   :  { %v99_v9 = vadd.f32 %v113_v5, %v98_v8 }
  0xde   :  { %108 = vst [vmem:[%s175_s3 + $0x8] sm:$0xff] %v104_v7 }
  0xdf   :  { %107 = vst [vmem:[%s175_s3] sm:$0xff] %v99_v9 }

// kernel: lstm_pr_forward.7
= control target key start
LH: loop header
LB: loop body
LE: loop exit
PB: predicated region body
PF: predicated region fallthrough
CT: control target
= control target key end

     0   :  { %vm27_vm0 = vcmask 261120   ;;  %s190_s1 = inlined_call_operand.vmem [shape: f32[32,128], index: 1, kind: input, shape index: {}]   ;;  %s191_s0 = inlined_call_operand.vmem [shape: f32[16,32], index: 0, kind: input, shape index: {}]   ;;  %s192_s2 = inlined_call_operand.vmem [shape: f32[1,128], index: 2, kind: input, shape index: {}]   ;;  %s193_s3 = inlined_call_operand.vmem [shape: f32[16,128], index: 3, kind: output, shape index: {}]  }
   0x1   :  { %v16_v0 = vld [vmem:[%s190_s1] sm:$0xff]  ;;  %v17_v1 = vld [vmem:[%s190_s1 + $0x8] sm:$0xff]  ;;  %v18_v2 = vld [vmem:[%s190_s1 + $0x10] sm:$0xff] }
   0x2   :  { %v135_v3 = vpack.c.bf16 %v17_v1, %v16_v0  ;;  %v19_v4 = vld [vmem:[%s190_s1 + $0x18] sm:$0xff]  ;;  %v14_v5 = vld [vmem:[%s191_s0] sm:$0xff]  ;;  %v15_v7 = vld [vmem:[%s191_s0 + $0x8] sm:$0xff] }
   0x3   :  { %v139_v6 = vpack.c.bf16 %v19_v4, %v18_v2  ;;  %132 = vmatprep.mubr.msk.f32.mxu0 %vm27_vm0, %v14_v5  ;;  %v115_v8 = vld [vmem:[%s192_s2] ss:$0 sm:$0xff] }
   0x4   :  { %136 = vmatprep.subr.bf16.mxu0 %v135_v3 }
   0x5   :  { %138 = vmatpush3.bf16.msra.mxu0 %v135_v3 }
   0x6   :  { %140 = vmatprep.subr.bf16.mxu0 %v139_v6 }
   0x9   :  { %142 = vmatpush3.bf16.msra.mxu0 %v139_v6 }
   0xc   :  { %133 = vmatmul.mubr.msk.f32.vlgmr.msra.gmra.mrb[0].mxu0 %vm27_vm0, %v15_v7 }
  0xdf   :  { %v134_v9 = vpop.f32.mrb[0].mxu0 }
  0xe0   :  { %v106_v10 = vadd.f32 %v134_v9, %v115_v8  ;;  %v100_v11 = vpop.f32.mrb[1].mxu0 }
  0xe1   :  { %v101_v12 = vadd.f32 %v115_v8, %v100_v11 }
  0xe2   :  { %110 = vst [vmem:[%s193_s3 + $0x8] sm:$0xff] %v106_v10 }
  0xe3   :  { %109 = vst [vmem:[%s193_s3] sm:$0xff] %v101_v12 }

// kernel: lstm_pr_forward.6
= control target key start
LH: loop header
LB: loop body
LE: loop exit
PB: predicated region body
PF: predicated region fallthrough
CT: control target
= control target key end

     0   :  { %vm25_vm0 = vcmask 254976   ;;  %v1300_v0 = vmov 0.0|0.0   ;;  %vm1301_vm1 = vmmov 0   ;;  %v1302_v4 = vmov 0.0   ;;  %s1303_s9 = smov 64   ;;  %s1304_s10 = smov 32   ;;  %s1549_s1 = inlined_call_operand.vmem [shape: f32[32,128], index: 1, kind: input, shape index: {}]   ;;  %s1550_s2 = inlined_call_operand.vmem [shape: f32[2,32], index: 2, kind: input, shape index: {}]   ;;  %s1551_s3 = inlined_call_operand.vmem [shape: f32[2,32], index: 3, kind: input, shape index: {}]   ;;  %s1552_s0 = inlined_call_operand.vmem [shape: f32[8,2,128], index: 0, kind: input, shape index: {}]   ;;  %s1553_s4 = inlined_call_operand.vmem [shape: f32[8,2,32], index: 4, kind: output, shape index: {0}]   ;;  %s1554_s6 = inlined_call_operand.vmem [shape: f32[2,32], index: 6, kind: output, shape index: {2}]   ;;  %s1555_s5 = inlined_call_operand.vmem [shape: f32[2,32], index: 5, kind: output, shape index: {1}]  }
   0x1   :  { %1182 = vmatprep.subr.bf16.mxu0 %v1300_v0  ;;  %v31_v1 = vld [vmem:[%s1549_s1] sm:$0xff]  ;;  %v32_v2 = vld [vmem:[%s1549_s1 + $0x8] sm:$0xff]  ;;  %v33_v3 = vld [vmem:[%s1549_s1 + $0x10] sm:$0xff]  ;;  %1102 = vmatprep.mubr.msk.f32.mxu0 %vm1301_vm1, %v1302_v4  ;;  %vm35_vm2 = vcmask 261120  }
   0x2   :  { %v1353_v5 = vpack.c.bf16 %v32_v2, %v31_v1  ;;  %v34_v6 = vld [vmem:[%s1549_s1 + $0x18] sm:$0xff]  ;;  %v24_v7 = vld [vmem:[%s1550_s2] sm:$0x3]  ;;  %1188 = vmatprep.subr.bf16.mxu1 %v1300_v0  ;;  %1113 = vmatprep.mubr.msk.f32.mxu1 %vm1301_vm1, %v1302_v4  ;;  %v1026_v34 = vld [vmem:[%s1552_s0 + $0x2] sm:$0x3] }
   0x3   :  { %26 = vst.msk [vmem:[#allocation2] sm:$0x3] %vm25_vm0, %v24_v7  ;;  %v1366_v8 = vpack.c.bf16 %v34_v6, %v33_v3  ;;  %v27_v10 = vld [vmem:[%s1551_s3] sm:$0x3]  ;;  %s1305_s3 = smov 96  }
   0x4   :  { %1184 = vmatpush3.bf16.msra.mxu0 %v1353_v5  ;;  %1190 = vmatpush3.bf16.msra.mxu1 %v1353_v5  ;;  %28 = vst.msk [vmem:[#allocation3] sm:$0x3] %vm25_vm0, %v27_v10  ;;  %v29_v11 = vld [vmem:[%s1552_s0] sm:$0x3]  ;;  %v1030_v56 = vld [vmem:[%s1552_s0 + $0x4] sm:$0x3] }
   0x5   :  { %1185 = vmatprep.subr.bf16.mxu0 %v1300_v0  ;;  %1191 = vmatprep.subr.bf16.mxu1 %v1300_v0 }
   0x8   :  { %1187 = vmatpush3.bf16.msra.mxu0 %v1366_v8  ;;  %1193 = vmatpush3.bf16.msra.mxu1 %v1366_v8 }
   0x9   :  { %1194 = vmatprep.subr.bf16.mxu0 %v1300_v0  ;;  %1200 = vmatprep.subr.bf16.mxu1 %v1300_v0 }
   0xa   :  { %v30_v9 = vld [vmem:[#allocation2] sm:$0x3] }
   0xb   :  { %1103 = vmatmul.mubr.msk.f32.vlgmr.msra.gmra.mrb[0].mxu0 %vm35_vm2, %v30_v9  ;;  %v117_v16 = vld [vmem:[#allocation3] sm:$0x3] }
   0xc   :  { %1196 = vmatpush3.bf16.msra.mxu0 %v1353_v5  ;;  %1124 = vmatprep.mubr.msk.f32.mxu0 %vm1301_vm1, %v1302_v4 }
   0xd   :  { %1197 = vmatprep.subr.bf16.mxu0 %v1300_v0 }
  0x10   :  { %1199 = vmatpush3.bf16.msra.mxu0 %v1366_v8 }
  0x11   :  { %1206 = vmatprep.subr.bf16.mxu0 %v1300_v0 }
  0xde   :  { %v105_v12 = vpop.f32.mrb[0].mxu0 }
  0xdf   :  { %v109_v13 = vadd.f32 %v105_v12, %v29_v11  ;;  %v1104_v14 = vpop.f32.mrb[1].mxu0 }
  0xe1   :  { %1236 = vtanh.f32 %v109_v13  ;;  %v1025_v17 = vmul.f32 -1.442695, %v109_v13 }
  0xe3   :  { %1238 = vpow2.f32 %v1025_v17 }
  0xeb   :  { %v1237_v15 = vpop.eup %1236 }
  0xec   :  { %124 = vrot.lane.b32.xlu0 %v1237_v15, %s1303_s9 }
  0xed   :  { %v1239_v18 = vpop.eup %1238 }
  0xee   :  { %v113_v19 = vadd.f32 1.0, %v1239_v18  ;;  %v1034_v18 = vld [vmem:[%s1552_s0 + $0x6] sm:$0x3] }
  0xf0   :  { %119 = vrot.lane.b32.xlu0 %v117_v16, %s1304_s10  ;;  %1240 = vrcp.f32 %v113_v19 }
  0xfa   :  { %v1241_v20 = vpop.eup %1240 }
 0x15e   :  { %v125_v21 = vpop.permute.xlu0 %124 }
 0x15f   :  { %v127_v22 = vmul.f32 %v1241_v20, %v125_v21 }
 0x161   :  { %129 = vrot.lane.b32.xlu1 %v127_v22, %s1304_s10 }
 0x162   :  { %v120_v23 = vpop.permute.xlu0 %119 }
 0x163   :  { %v122_v24 = vmul.f32 %v1241_v20, %v120_v23 }
 0x1d3   :  { %v130_v25 = vpop.permute.xlu1 %129 }
 0x1d4   :  { %v132_v26 = vadd.f32 %v130_v25, %v122_v24 }
 0x1d6   :  { %1242 = vtanh.f32 %v132_v26 }
 0x1e0   :  { %v1243_v27 = vpop.eup %1242 }
 0x1e1   :  { %135 = vrot.lane.b32.xlu1 %v1243_v27, %s1303_s9 }
 0x1e5   :  { %140 = vrot.lane.b32.xlu1 %v132_v26, %s1305_s3 }
 0x253   :  { %v136_v28 = vpop.permute.xlu1 %135 }
 0x254   :  { %v138_v29 = vmul.f32 %v1241_v20, %v136_v28 }
 0x256   :  { %146 = vrot.lane.b32.xlu0 %v138_v29, %s1304_s10 }
 0x257   :  { %v141_v30 = vpop.permute.xlu1 %140 }
 0x258   :  { %144 = vst.msk [vmem:[#allocation3] sm:$0x3] %vm25_vm0, %v141_v30 }
 0x25f   :  { %v239_v31 = vld [vmem:[#allocation3] sm:$0x3] }
 0x260   :  { %241 = vrot.lane.b32.xlu1 %v239_v31, %s1304_s10 }
 0x2c8   :  { %v147_v32 = vpop.permute.xlu0 %146 }
 0x2c9   :  { %149 = vst.msk [vmem:[#allocation2] sm:$0x3] %vm25_vm0, %v147_v32  ;;  %150 = vst.msk [vmem:[%s1553_s4] sm:$0x3] %vm25_vm0, %v147_v32 }
 0x2d0   :  { %v153_v33 = vld [vmem:[#allocation2] sm:$0x3] }
 0x2d1   :  { %1114 = vmatmul.mubr.msk.f32.vlgmr.msra.gmra.mrb[0].mxu1 %vm35_vm2, %v153_v33 }
 0x2d2   :  { %1202 = vmatpush3.bf16.msra.mxu1 %v1353_v5  ;;  %1135 = vmatprep.mubr.msk.f32.mxu1 %vm1301_vm1, %v1302_v4  ;;  %v242_v45 = vpop.permute.xlu1 %241 }
 0x2d3   :  { %1203 = vmatprep.subr.bf16.mxu1 %v1300_v0 }
 0x2d6   :  { %1205 = vmatpush3.bf16.msra.mxu1 %v1366_v8 }
 0x2d7   :  { %1212 = vmatprep.subr.bf16.mxu1 %v1300_v0 }
 0x3a4   :  { %v227_v35 = vpop.f32.mrb[0].mxu1 }
 0x3a5   :  { %v231_v36 = vadd.f32 %v1026_v34, %v227_v35  ;;  %v1115_v37 = vpop.f32.mrb[1].mxu1 }
 0x3a7   :  { %1244 = vtanh.f32 %v231_v36  ;;  %v1028_v39 = vmul.f32 -1.442695, %v231_v36 }
 0x3a9   :  { %1246 = vpow2.f32 %v1028_v39 }
 0x3b1   :  { %v1245_v38 = vpop.eup %1244 }
 0x3b2   :  { %246 = vrot.lane.b32.xlu0 %v1245_v38, %s1303_s9 }
 0x3b3   :  { %v1247_v40 = vpop.eup %1246 }
 0x3b4   :  { %v235_v41 = vadd.f32 1.0, %v1247_v40  ;;  %v1038_v40 = vld [vmem:[%s1552_s0 + $0x8] sm:$0x3] }
 0x3b6   :  { %1248 = vrcp.f32 %v235_v41 }
 0x3c0   :  { %v1249_v42 = vpop.eup %1248 }
 0x3c1   :  { %v244_v46 = vmul.f32 %v1249_v42, %v242_v45 }
 0x424   :  { %v247_v43 = vpop.permute.xlu0 %246 }
 0x425   :  { %v249_v44 = vmul.f32 %v1249_v42, %v247_v43 }
 0x427   :  { %251 = vrot.lane.b32.xlu0 %v249_v44, %s1304_s10 }
 0x499   :  { %v252_v47 = vpop.permute.xlu0 %251 }
 0x49a   :  { %v254_v48 = vadd.f32 %v252_v47, %v244_v46 }
 0x49c   :  { %1250 = vtanh.f32 %v254_v48 }
 0x4a6   :  { %v1251_v49 = vpop.eup %1250 }
 0x4a7   :  { %257 = vrot.lane.b32.xlu1 %v1251_v49, %s1303_s9 }
 0x4ab   :  { %262 = vrot.lane.b32.xlu1 %v254_v48, %s1305_s3 }
 0x519   :  { %v258_v50 = vpop.permute.xlu1 %257 }
 0x51a   :  { %v260_v51 = vmul.f32 %v1249_v42, %v258_v50 }
 0x51c   :  { %267 = vrot.lane.b32.xlu0 %v260_v51, %s1304_s10 }
 0x51d   :  { %v263_v52 = vpop.permute.xlu1 %262 }
 0x51e   :  { %265 = vst.msk [vmem:[#allocation3] sm:$0x3] %vm25_vm0, %v263_v52 }
 0x525   :  { %v361_v53 = vld [vmem:[#allocation3] sm:$0x3] }
 0x526   :  { %363 = vrot.lane.b32.xlu1 %v361_v53, %s1304_s10 }
 0x58e   :  { %v268_v54 = vpop.permute.xlu0 %267 }
 0x58f   :  { %270 = vst.msk [vmem:[#allocation2] sm:$0x3] %vm25_vm0, %v268_v54  ;;  %1029 = vst.msk [vmem:[%s1553_s4 + $0x2] sm:$0x3] %vm25_vm0, %v268_v54 }
 0x596   :  { %v275_v55 = vld [vmem:[#allocation2] sm:$0x3] }
 0x597   :  { %1125 = vmatmul.mubr.msk.f32.vlgmr.msra.gmra.mrb[2].mxu0 %vm35_vm2, %v275_v55 }
 0x598   :  { %1208 = vmatpush3.bf16.msra.mxu0 %v1353_v5  ;;  %1146 = vmatprep.mubr.msk.f32.mxu0 %vm1301_vm1, %v1302_v4  ;;  %v364_v6 = vpop.permute.xlu1 %363 }
 0x599   :  { %1209 = vmatprep.subr.bf16.mxu0 %v1300_v0 }
 0x59c   :  { %1211 = vmatpush3.bf16.msra.mxu0 %v1366_v8 }
 0x59d   :  { %1218 = vmatprep.subr.bf16.mxu0 %v1300_v0 }
 0x66a   :  { %v349_v57 = vpop.f32.mrb[2].mxu0 }
 0x66b   :  { %v353_v58 = vadd.f32 %v1030_v56, %v349_v57  ;;  %v1126_v59 = vpop.f32.mrb[3].mxu0 }
 0x66d   :  { %1252 = vtanh.f32 %v353_v58  ;;  %v1032_v61 = vmul.f32 -1.442695, %v353_v58 }
 0x66f   :  { %1254 = vpow2.f32 %v1032_v61 }
 0x677   :  { %v1253_v60 = vpop.eup %1252 }
 0x678   :  { %368 = vrot.lane.b32.xlu0 %v1253_v60, %s1303_s9 }
 0x679   :  { %v1255_v62 = vpop.eup %1254 }
 0x67a   :  { %v357_v63 = vadd.f32 1.0, %v1255_v62  ;;  %v1042_v62 = vld [vmem:[%s1552_s0 + $0xa] sm:$0x3] }
 0x67c   :  { %1256 = vrcp.f32 %v357_v63 }
 0x686   :  { %v1257_v1 = vpop.eup %1256 }
 0x687   :  { %v366_v7 = vmul.f32 %v1257_v1, %v364_v6 }
 0x6ea   :  { %v369_v2 = vpop.permute.xlu0 %368 }
 0x6eb   :  { %v371_v3 = vmul.f32 %v1257_v1, %v369_v2 }
 0x6ed   :  { %373 = vrot.lane.b32.xlu0 %v371_v3, %s1304_s10 }
 0x75f   :  { %v374_v9 = vpop.permute.xlu0 %373 }
 0x760   :  { %v376_v10 = vadd.f32 %v374_v9, %v366_v7 }
 0x762   :  { %1258 = vtanh.f32 %v376_v10 }
 0x76c   :  { %v1259_v11 = vpop.eup %1258 }
 0x76d   :  { %379 = vrot.lane.b32.xlu1 %v1259_v11, %s1303_s9 }
 0x771   :  { %384 = vrot.lane.b32.xlu1 %v376_v10, %s1305_s3 }
 0x7df   :  { %v380_v12 = vpop.permute.xlu1 %379 }
 0x7e0   :  { %v382_v13 = vmul.f32 %v1257_v1, %v380_v12 }
 0x7e2   :  { %389 = vrot.lane.b32.xlu0 %v382_v13, %s1304_s10 }
 0x7e3   :  { %v385_v14 = vpop.permute.xlu1 %384 }
 0x7e4   :  { %387 = vst.msk [vmem:[#allocation3] sm:$0x3] %vm25_vm0, %v385_v14 }
 0x7eb   :  { %v483_v15 = vld [vmem:[#allocation3] sm:$0x3] }
 0x7ec   :  { %485 = vrot.lane.b32.xlu1 %v483_v15, %s1304_s10 }
 0x854   :  { %v390_v16 = vpop.permute.xlu0 %389 }
 0x855   :  { %392 = vst.msk [vmem:[#allocation2] sm:$0x3] %vm25_vm0, %v390_v16  ;;  %1033 = vst.msk [vmem:[%s1553_s4 + $0x4] sm:$0x3] %vm25_vm0, %v390_v16 }
 0x85c   :  { %v397_v17 = vld [vmem:[#allocation2] sm:$0x3] }
 0x85d   :  { %1136 = vmatmul.mubr.msk.f32.vlgmr.msra.gmra.mrb[2].mxu1 %vm35_vm2, %v397_v17 }
 0x85e   :  { %1214 = vmatpush3.bf16.msra.mxu1 %v1353_v5  ;;  %1157 = vmatprep.mubr.msk.f32.mxu1 %vm1301_vm1, %v1302_v4  ;;  %v486_v29 = vpop.permute.xlu1 %485 }
 0x85f   :  { %1215 = vmatprep.subr.bf16.mxu1 %v1300_v0 }
 0x862   :  { %1217 = vmatpush3.bf16.msra.mxu1 %v1366_v8 }
 0x863   :  { %1224 = vmatprep.subr.bf16.mxu1 %v1300_v0 }
 0x930   :  { %v471_v19 = vpop.f32.mrb[2].mxu1 }
 0x931   :  { %v475_v20 = vadd.f32 %v1034_v18, %v471_v19  ;;  %v1137_v21 = vpop.f32.mrb[3].mxu1 }
 0x933   :  { %1260 = vtanh.f32 %v475_v20  ;;  %v1036_v23 = vmul.f32 -1.442695, %v475_v20  ;;  %v1046_v20 = vld [vmem:[%s1552_s0 + $0xc] sm:$0x3] }
 0x935   :  { %1262 = vpow2.f32 %v1036_v23 }
 0x93d   :  { %v1261_v22 = vpop.eup %1260 }
 0x93e   :  { %490 = vrot.lane.b32.xlu0 %v1261_v22, %s1303_s9 }
 0x93f   :  { %v1263_v24 = vpop.eup %1262 }
 0x940   :  { %v479_v25 = vadd.f32 1.0, %v1263_v24 }
 0x942   :  { %1264 = vrcp.f32 %v479_v25 }
 0x94c   :  { %v1265_v26 = vpop.eup %1264 }
 0x94d   :  { %v488_v30 = vmul.f32 %v1265_v26, %v486_v29 }
 0x9b0   :  { %v491_v27 = vpop.permute.xlu0 %490 }
 0x9b1   :  { %v493_v28 = vmul.f32 %v1265_v26, %v491_v27 }
 0x9b3   :  { %495 = vrot.lane.b32.xlu0 %v493_v28, %s1304_s10 }
 0xa25   :  { %v496_v31 = vpop.permute.xlu0 %495 }
 0xa26   :  { %v498_v32 = vadd.f32 %v496_v31, %v488_v30 }
 0xa28   :  { %1266 = vtanh.f32 %v498_v32 }
 0xa32   :  { %v1267_v33 = vpop.eup %1266 }
 0xa33   :  { %501 = vrot.lane.b32.xlu1 %v1267_v33, %s1303_s9 }
 0xa37   :  { %506 = vrot.lane.b32.xlu1 %v498_v32, %s1305_s3 }
 0xaa5   :  { %v502_v34 = vpop.permute.xlu1 %501 }
 0xaa6   :  { %v504_v35 = vmul.f32 %v1265_v26, %v502_v34 }
 0xaa8   :  { %511 = vrot.lane.b32.xlu0 %v504_v35, %s1304_s10 }
 0xaa9   :  { %v507_v36 = vpop.permute.xlu1 %506 }
 0xaaa   :  { %509 = vst.msk [vmem:[#allocation3] sm:$0x3] %vm25_vm0, %v507_v36 }
 0xab1   :  { %v605_v37 = vld [vmem:[#allocation3] sm:$0x3] }
 0xab2   :  { %607 = vrot.lane.b32.xlu1 %v605_v37, %s1304_s10 }
 0xb1a   :  { %v512_v38 = vpop.permute.xlu0 %511 }
 0xb1b   :  { %514 = vst.msk [vmem:[#allocation2] sm:$0x3] %vm25_vm0, %v512_v38  ;;  %1037 = vst.msk [vmem:[%s1553_s4 + $0x6] sm:$0x3] %vm25_vm0, %v512_v38 }
 0xb22   :  { %v519_v39 = vld [vmem:[#allocation2] sm:$0x3] }
 0xb23   :  { %1147 = vmatmul.mubr.msk.f32.vlgmr.msra.gmra.mrb[4].mxu0 %vm35_vm2, %v519_v39 }
 0xb24   :  { %1220 = vmatpush3.bf16.msra.mxu0 %v1353_v5  ;;  %1168 = vmatprep.mubr.msk.f32.mxu0 %vm1301_vm1, %v1302_v4  ;;  %v608_v51 = vpop.permute.xlu1 %607 }
 0xb25   :  { %1221 = vmatprep.subr.bf16.mxu0 %v1300_v0 }
 0xb28   :  { %1223 = vmatpush3.bf16.msra.mxu0 %v1366_v8 }
 0xbf6   :  { %v593_v41 = vpop.f32.mrb[4].mxu0 }
 0xbf7   :  { %v597_v42 = vadd.f32 %v1038_v40, %v593_v41  ;;  %v1148_v43 = vpop.f32.mrb[5].mxu0 }
 0xbf9   :  { %1268 = vtanh.f32 %v597_v42  ;;  %v1040_v45 = vmul.f32 -1.442695, %v597_v42  ;;  %v1050_v42 = vld [vmem:[%s1552_s0 + $0xe] sm:$0x3] }
 0xbfb   :  { %1270 = vpow2.f32 %v1040_v45 }
 0xc03   :  { %v1269_v44 = vpop.eup %1268 }
 0xc04   :  { %612 = vrot.lane.b32.xlu0 %v1269_v44, %s1303_s9 }
 0xc05   :  { %v1271_v46 = vpop.eup %1270 }
 0xc06   :  { %v601_v47 = vadd.f32 1.0, %v1271_v46 }
 0xc08   :  { %1272 = vrcp.f32 %v601_v47 }
 0xc12   :  { %v1273_v48 = vpop.eup %1272 }
 0xc13   :  { %v610_v52 = vmul.f32 %v1273_v48, %v608_v51 }
 0xc76   :  { %v613_v49 = vpop.permute.xlu0 %612 }
 0xc77   :  { %v615_v50 = vmul.f32 %v1273_v48, %v613_v49 }
 0xc79   :  { %617 = vrot.lane.b32.xlu0 %v615_v50, %s1304_s10 }
 0xceb   :  { %v618_v53 = vpop.permute.xlu0 %617 }
 0xcec   :  { %v620_v54 = vadd.f32 %v618_v53, %v610_v52 }
 0xcee   :  { %1274 = vtanh.f32 %v620_v54 }
 0xcf8   :  { %v1275_v55 = vpop.eup %1274 }
 0xcf9   :  { %623 = vrot.lane.b32.xlu1 %v1275_v55, %s1303_s9 }
 0xcfd   :  { %628 = vrot.lane.b32.xlu1 %v620_v54, %s1305_s3 }
 0xd6b   :  { %v624_v56 = vpop.permute.xlu1 %623 }
 0xd6c   :  { %v626_v57 = vmul.f32 %v1273_v48, %v624_v56 }
 0xd6e   :  { %633 = vrot.lane.b32.xlu0 %v626_v57, %s1304_s10 }
 0xd6f   :  { %v629_v58 = vpop.permute.xlu1 %628 }
 0xd70   :  { %631 = vst.msk [vmem:[#allocation3] sm:$0x3] %vm25_vm0, %v629_v58 }
 0xd77   :  { %v727_v59 = vld [vmem:[#allocation3] sm:$0x3] }
 0xd78   :  { %729 = vrot.lane.b32.xlu1 %v727_v59, %s1304_s10 }
 0xde0   :  { %v634_v60 = vpop.permute.xlu0 %633 }
 0xde1   :  { %636 = vst.msk [vmem:[#allocation2] sm:$0x3] %vm25_vm0, %v634_v60  ;;  %1041 = vst.msk [vmem:[%s1553_s4 + $0x8] sm:$0x3] %vm25_vm0, %v634_v60 }
 0xde8   :  { %v641_v61 = vld [vmem:[#allocation2] sm:$0x3] }
 0xde9   :  { %1158 = vmatmul.mubr.msk.f32.vlgmr.msra.gmra.mrb[4].mxu1 %vm35_vm2, %v641_v61 }
 0xdea   :  { %1226 = vmatpush3.bf16.msra.mxu1 %v1353_v5  ;;  %1179 = vmatprep.mubr.msk.f32.mxu1 %vm1301_vm1, %v1302_v4 }
 0xdeb   :  { %1227 = vmatprep.subr.bf16.mxu1 %v1300_v0 }
 0xdee   :  { %1229 = vmatpush3.bf16.msra.mxu1 %v1366_v8  ;;  %v730_v8 = vpop.permute.xlu1 %729 }
 0xebc   :  { %v715_v63 = vpop.f32.mrb[4].mxu1 }
 0xebd   :  { %v719_v1 = vadd.f32 %v1042_v62, %v715_v63  ;;  %v1159_v2 = vpop.f32.mrb[5].mxu1 }
 0xebf   :  { %1276 = vtanh.f32 %v719_v1  ;;  %v1044_v6 = vmul.f32 -1.442695, %v719_v1 }
 0xec1   :  { %1278 = vpow2.f32 %v1044_v6 }
 0xec9   :  { %v1277_v3 = vpop.eup %1276 }
 0xeca   :  { %734 = vrot.lane.b32.xlu0 %v1277_v3, %s1303_s9 }
 0xecb   :  { %v1279_v5 = vpop.eup %1278 }
 0xecc   :  { %v723_v7 = vadd.f32 1.0, %v1279_v5 }
 0xece   :  { %1280 = vrcp.f32 %v723_v7 }
 0xed8   :  { %v1281_v4 = vpop.eup %1280 }
 0xed9   :  { %v732_v10 = vmul.f32 %v1281_v4, %v730_v8 }
 0xf3c   :  { %v735_v0 = vpop.permute.xlu0 %734 }
 0xf3d   :  { %v737_v9 = vmul.f32 %v1281_v4, %v735_v0 }
 0xf3f   :  { %739 = vrot.lane.b32.xlu0 %v737_v9, %s1304_s10 }
 0xfb1   :  { %v740_v11 = vpop.permute.xlu0 %739 }
 0xfb2   :  { %v742_v12 = vadd.f32 %v740_v11, %v732_v10 }
 0xfb4   :  { %1282 = vtanh.f32 %v742_v12 }
 0xfbe   :  { %v1283_v13 = vpop.eup %1282 }
 0xfbf   :  { %745 = vrot.lane.b32.xlu1 %v1283_v13, %s1303_s9 }
 0xfc3   :  { %750 = vrot.lane.b32.xlu1 %v742_v12, %s1305_s3 }
0x1031   :  { %v746_v14 = vpop.permute.xlu1 %745 }
0x1032   :  { %v748_v15 = vmul.f32 %v1281_v4, %v746_v14 }
0x1034   :  { %755 = vrot.lane.b32.xlu0 %v748_v15, %s1304_s10 }
0x1035   :  { %v751_v16 = vpop.permute.xlu1 %750 }
0x1036   :  { %753 = vst.msk [vmem:[#allocation3] sm:$0x3] %vm25_vm0, %v751_v16 }
0x103d   :  { %v849_v17 = vld [vmem:[#allocation3] sm:$0x3] }
0x103e   :  { %851 = vrot.lane.b32.xlu1 %v849_v17, %s1304_s10 }
0x10a6   :  { %v756_v18 = vpop.permute.xlu0 %755 }
0x10a7   :  { %758 = vst.msk [vmem:[#allocation2] sm:$0x3] %vm25_vm0, %v756_v18  ;;  %1045 = vst.msk [vmem:[%s1553_s4 + $0xa] sm:$0x3] %vm25_vm0, %v756_v18 }
0x10ae   :  { %v763_v19 = vld [vmem:[#allocation2] sm:$0x3] }
0x10af   :  { %1169 = vmatmul.mubr.msk.f32.vlgmr.msra.gmra.mrb[6].mxu0 %vm35_vm2, %v763_v19 }
0x10b0   :  { %v852_v31 = vpop.permute.xlu1 %851 }
0x1182   :  { %v837_v21 = vpop.f32.mrb[6].mxu0 }
0x1183   :  { %v841_v22 = vadd.f32 %v1046_v20, %v837_v21  ;;  %v1170_v23 = vpop.f32.mrb[7].mxu0 }
0x1185   :  { %1284 = vtanh.f32 %v841_v22  ;;  %v1048_v25 = vmul.f32 -1.442695, %v841_v22 }
0x1187   :  { %1286 = vpow2.f32 %v1048_v25 }
0x118f   :  { %v1285_v24 = vpop.eup %1284 }
0x1190   :  { %856 = vrot.lane.b32.xlu0 %v1285_v24, %s1303_s9 }
0x1191   :  { %v1287_v26 = vpop.eup %1286 }
0x1192   :  { %v845_v27 = vadd.f32 1.0, %v1287_v26 }
0x1194   :  { %1288 = vrcp.f32 %v845_v27 }
0x119e   :  { %v1289_v28 = vpop.eup %1288 }
0x119f   :  { %v854_v32 = vmul.f32 %v1289_v28, %v852_v31 }
0x1202   :  { %v857_v29 = vpop.permute.xlu0 %856 }
0x1203   :  { %v859_v30 = vmul.f32 %v1289_v28, %v857_v29 }
0x1205   :  { %861 = vrot.lane.b32.xlu0 %v859_v30, %s1304_s10 }
0x1277   :  { %v862_v33 = vpop.permute.xlu0 %861 }
0x1278   :  { %v864_v34 = vadd.f32 %v862_v33, %v854_v32 }
0x127a   :  { %1290 = vtanh.f32 %v864_v34 }
0x1284   :  { %v1291_v35 = vpop.eup %1290 }
0x1285   :  { %867 = vrot.lane.b32.xlu1 %v1291_v35, %s1303_s9 }
0x1289   :  { %872 = vrot.lane.b32.xlu1 %v864_v34, %s1305_s3 }
0x12f7   :  { %v868_v36 = vpop.permute.xlu1 %867 }
0x12f8   :  { %v870_v37 = vmul.f32 %v1289_v28, %v868_v36 }
0x12fa   :  { %877 = vrot.lane.b32.xlu0 %v870_v37, %s1304_s10 }
0x12fb   :  { %v873_v38 = vpop.permute.xlu1 %872 }
0x12fc   :  { %875 = vst.msk [vmem:[#allocation3] sm:$0x3] %vm25_vm0, %v873_v38 }
0x1303   :  { %v971_v39 = vld [vmem:[#allocation3] sm:$0x3] }
0x1304   :  { %973 = vrot.lane.b32.xlu1 %v971_v39, %s1304_s10 }
0x136c   :  { %v878_v40 = vpop.permute.xlu0 %877 }
0x136d   :  { %880 = vst.msk [vmem:[#allocation2] sm:$0x3] %vm25_vm0, %v878_v40  ;;  %1049 = vst.msk [vmem:[%s1553_s4 + $0xc] sm:$0x3] %vm25_vm0, %v878_v40 }
0x1374   :  { %v885_v41 = vld [vmem:[#allocation2] sm:$0x3] }
0x1375   :  { %1180 = vmatmul.mubr.msk.f32.vlgmr.msra.gmra.mrb[6].mxu1 %vm35_vm2, %v885_v41 }
0x1376   :  { %v974_v53 = vpop.permute.xlu1 %973 }
0x1448   :  { %v959_v43 = vpop.f32.mrb[6].mxu1 }
0x1449   :  { %v963_v44 = vadd.f32 %v1050_v42, %v959_v43  ;;  %v1181_v45 = vpop.f32.mrb[7].mxu1 }
0x144b   :  { %1292 = vtanh.f32 %v963_v44  ;;  %v1052_v47 = vmul.f32 -1.442695, %v963_v44 }
0x144d   :  { %1294 = vpow2.f32 %v1052_v47 }
0x1455   :  { %v1293_v46 = vpop.eup %1292 }
0x1456   :  { %978 = vrot.lane.b32.xlu0 %v1293_v46, %s1303_s9 }
0x1457   :  { %v1295_v48 = vpop.eup %1294 }
0x1458   :  { %v967_v49 = vadd.f32 1.0, %v1295_v48 }
0x145a   :  { %1296 = vrcp.f32 %v967_v49 }
0x1464   :  { %v1297_v50 = vpop.eup %1296 }
0x1465   :  { %v976_v54 = vmul.f32 %v1297_v50, %v974_v53 }
0x14c8   :  { %v979_v51 = vpop.permute.xlu0 %978 }
0x14c9   :  { %v981_v52 = vmul.f32 %v1297_v50, %v979_v51 }
0x14cb   :  { %983 = vrot.lane.b32.xlu0 %v981_v52, %s1304_s10 }
0x153d   :  { %v984_v55 = vpop.permute.xlu0 %983 }
0x153e   :  { %v986_v56 = vadd.f32 %v984_v55, %v976_v54 }
0x1540   :  { %1298 = vtanh.f32 %v986_v56  ;;  %994 = vrot.lane.b32.xlu0 %v986_v56, %s1305_s3 }
0x154a   :  { %v1299_v57 = vpop.eup %1298 }
0x154b   :  { %989 = vrot.lane.b32.xlu1 %v1299_v57, %s1303_s9 }
0x15b2   :  { %v995_v58 = vpop.permute.xlu0 %994 }
0x15b3   :  { %997 = vst.msk [vmem:[#allocation3] sm:$0x3] %vm25_vm0, %v995_v58 }
0x15ba   :  { %v1010_v59 = vld [vmem:[#allocation3] sm:$0x3] }
0x15bb   :  { %1011 = vst.msk [vmem:[%s1554_s6] sm:$0x3] %vm25_vm0, %v1010_v59 }
0x15bd   :  { %v990_v60 = vpop.permute.xlu1 %989 }
0x15be   :  { %v992_v61 = vmul.f32 %v1297_v50, %v990_v60 }
0x15c0   :  { %999 = vrot.lane.b32.xlu1 %v992_v61, %s1304_s10 }
0x1632   :  { %v1000_v62 = vpop.permute.xlu1 %999 }
0x1633   :  { %1002 = vst.msk [vmem:[#allocation2] sm:$0x3] %vm25_vm0, %v1000_v62  ;;  %1053 = vst.msk [vmem:[%s1553_s4 + $0xe] sm:$0x3] %vm25_vm0, %v1000_v62 }
0x163a   :  { %v1008_v63 = vld [vmem:[#allocation2] sm:$0x3] }
0x163b   :  { %1009 = vst.msk [vmem:[%s1555_s5] sm:$0x3] %vm25_vm0, %v1008_v63 }

</bundles_post_ra>
